<compile_context>
chip_gen: v6e
topology: v6e:2x2x1
jax: 0.10.0
libtpu: 0.0.40
codegen_flags: <defaults>
</compile_context>

<pallas_src>
import math
import functools

import jax
import jax.numpy as jnp
from jax.experimental import pallas as pl
from jax.experimental.pallas import tpu as pltpu


def _gelu_tanh(x):
    # matches the PyTorch reference gelu() (tanh approximation); x*x*x avoids pow.
    c = math.sqrt(2.0 / math.pi)
    return 0.5 * x * (1.0 + jnp.tanh(c * (x + 0.044715 * (x * x * x))))


def ffn_kernel(x_ref, gamma_ref, beta_ref, w1_ref, b1_ref, w2_ref, b2_ref, o_ref):
    x = x_ref[...].astype(jnp.float32)                      # (tm, d_model)

    # LayerNorm over last dim, eps=1e-6 (f32)
    mean = jnp.mean(x, axis=-1, keepdims=True)
    xc = x - mean
    var = jnp.mean(xc * xc, axis=-1, keepdims=True)
    ln = xc * jax.lax.rsqrt(var + 1e-6)
    ln = ln * gamma_ref[...].astype(jnp.float32) + beta_ref[...].astype(jnp.float32)

    # w_1: ln @ W1t + b1   (W1t pre-transposed (d_model, d_ff), bf16 operands,
    # f32 accumulation on the MXU)
    h = jnp.dot(ln.astype(w1_ref.dtype), w1_ref[...],
                preferred_element_type=jnp.float32)
    h = h + b1_ref[...].astype(jnp.float32)

    # gelu (tanh approx) in f32; dropout_1 = identity
    g = _gelu_tanh(h)

    # w_2: g @ W2t + b2    (W2t pre-transposed (d_ff, d_model)); dropout_2 = identity
    y = jnp.dot(g.astype(w2_ref.dtype), w2_ref[...],
                preferred_element_type=jnp.float32)
    y = y + b2_ref[...].astype(jnp.float32)

    # residual in f32, cast back to output dtype
    o_ref[...] = (y + x).astype(o_ref.dtype)


@functools.partial(jax.jit, static_argnames=("tm", "weight_dtype"))
def positionwise_ffn(x, gamma, beta, w1, b1, w2, b2, *, tm=256,
                     weight_dtype=jnp.bfloat16):
    """x: [..., d_model]. w1: (d_ff, d_model), w2: (d_model, d_ff) (PyTorch layout).
    Returns same shape/dtype as x."""
    orig_shape = x.shape
    d_model = orig_shape[-1]
    d_ff = w1.shape[0]

    x2 = x.reshape(-1, d_model)
    n = x2.shape[0]

    # pad rows to the tile boundary (no divisibility requirement on the caller)
    n_tiles = pl.cdiv(n, tm)
    n_pad = n_tiles * tm
    if n_pad != n:
        x2 = jnp.pad(x2, ((0, n_pad - n), (0, 0)))

    # pre-transpose + cast weights ONCE in the wrapper (MXU-friendly, no per-step .T)
    w1t = w1.T.astype(weight_dtype)          # (d_model, d_ff)
    w2t = w2.T.astype(weight_dtype)          # (d_ff, d_model)

    # broadcastable 2-D views of the vector params
    gamma2 = gamma.reshape(1, d_model)
    beta2 = beta.reshape(1, d_model)
    b1_2 = b1.reshape(1, d_ff)
    b2_2 = b2.reshape(1, d_model)

    # explicit VMEM budget: weights (double-buffered), x/out tiles, f32 intermediates
    bpw = jnp.dtype(weight_dtype).itemsize
    bpx = jnp.dtype(x.dtype).itemsize
    est = (2 * 2 * d_model * d_ff * bpw                  # W1t + W2t, double-buffered
           + 2 * 2 * tm * d_model * bpx                  # x + out tiles, double-buffered
           + tm * d_ff * 4 + 4 * tm * d_model * 4        # f32 intermediates
           + 4 * (3 * d_model + d_ff) * 4)               # vector params
    vmem_limit = int(min(max(2 * est, 32 << 20), 64 << 20))

    out = pl.pallas_call(
        ffn_kernel,
        out_shape=jax.ShapeDtypeStruct((n_pad, d_model), x.dtype),
        grid_spec=pltpu.PrefetchScalarGridSpec(
            num_scalar_prefetch=0,
            grid=(n_tiles,),
            in_specs=[
                pl.BlockSpec((tm, d_model), lambda i: (i, 0)),       # x tile
                pl.BlockSpec((1, d_model), lambda i: (0, 0)),        # gamma
                pl.BlockSpec((1, d_model), lambda i: (0, 0)),        # beta
                pl.BlockSpec((d_model, d_ff), lambda i: (0, 0)),     # W1^T
                pl.BlockSpec((1, d_ff), lambda i: (0, 0)),           # b1
                pl.BlockSpec((d_ff, d_model), lambda i: (0, 0)),     # W2^T
                pl.BlockSpec((1, d_model), lambda i: (0, 0)),        # b2
            ],
            out_specs=pl.BlockSpec((tm, d_model), lambda i: (i, 0)),
        ),
        compiler_params=pltpu.CompilerParams(
            dimension_semantics=("parallel",),
            vmem_limit_bytes=vmem_limit),
    )(x2, gamma2, beta2, w1t, b1_2, w2t, b2_2)

    return out[:n].reshape(orig_shape)


def reference_ffn(x, gamma, beta, w1, b1, w2, b2):
    # pure-f32 reference matching the PyTorch module semantics
    xf = x.astype(jnp.float32)
    mean = jnp.mean(xf, axis=-1, keepdims=True)
    var = jnp.mean((xf - mean) ** 2, axis=-1, keepdims=True)
    ln = (xf - mean) / jnp.sqrt(var + 1e-6) * gamma + beta
    h = _gelu_tanh(ln @ w1.T + b1)
    y = h @ w2.T + b2
    return (y + xf).astype(x.dtype)


if __name__ == "__main__":
    # small shapes implied by the module: tokens over (batch, seq), feature dim d_model
    batch, seq, d_model, d_ff = 2, 8, 32, 64

    key = jax.random.PRNGKey(0)
    kx, k1, k2, k3, k4 = jax.random.split(key, 5)

    x = jax.random.normal(kx, (batch, seq, d_model), dtype=jnp.float32)

    # deterministic synthetic parameters (nn.Linear-style fan-in scaling)
    w1 = jax.random.normal(k1, (d_ff, d_model), dtype=jnp.float32) / math.sqrt(d_model)
    b1 = jax.random.normal(k2, (d_ff,), dtype=jnp.float32) * 0.01
    w2 = jax.random.normal(k3, (d_model, d_ff), dtype=jnp.float32) / math.sqrt(d_ff)
    b2 = jax.random.normal(k4, (d_model,), dtype=jnp.float32) * 0.01
    gamma = jnp.ones((d_model,), dtype=jnp.float32)   # LayerNorm weight
    beta = jnp.zeros((d_model,), dtype=jnp.float32)   # LayerNorm bias

    out = positionwise_ffn(x, gamma, beta, w1, b1, w2, b2)
    out = jax.block_until_ready(out)

    ref = reference_ffn(x, gamma, beta, w1, b1, w2, b2)
    assert out.shape == x.shape and out.dtype == x.dtype
    # tolerance loosened vs pure-f32 reference because the matmuls use bf16
    # operands (f32 accumulation) for MXU throughput.
    assert jnp.allclose(out, ref, atol=5e-2, rtol=5e-2), "mismatch vs reference"

    print("KERNEL_OK")
</pallas_src>

<mosaic_0001>
module attributes {stable_mosaic.version = 11 : i64} {
  func.func @ffn_kernel(%arg0: i32, %arg1: memref<256x32xf32, #tpu.memory_space<vmem>>, %arg2: memref<1x32xf32, #tpu.memory_space<vmem>>, %arg3: memref<1x32xf32, #tpu.memory_space<vmem>>, %arg4: memref<32x64xbf16, #tpu.memory_space<vmem>>, %arg5: memref<1x64xf32, #tpu.memory_space<vmem>>, %arg6: memref<64x32xbf16, #tpu.memory_space<vmem>>, %arg7: memref<1x32xf32, #tpu.memory_space<vmem>>, %arg8: memref<256x32xf32, #tpu.memory_space<vmem>>) attributes {dimension_semantics = [#tpu.dimension_semantics<parallel>], iteration_bounds = array<i64: 1>, scalar_prefetch = 0 : i64, scratch_operands = 0 : i64, tpu.core_type = #tpu.core_type<tc>, window_params = [{transform_indices = @transform_0, window_bounds = array<i64: 256, 32>}, {pipeline_mode = #tpu.pipeline_mode<synchronous>, transform_indices = @transform_1, window_bounds = array<i64: 1, 32>}, {pipeline_mode = #tpu.pipeline_mode<synchronous>, transform_indices = @transform_2, window_bounds = array<i64: 1, 32>}, {pipeline_mode = #tpu.pipeline_mode<synchronous>, transform_indices = @transform_3, window_bounds = array<i64: 32, 64>}, {pipeline_mode = #tpu.pipeline_mode<synchronous>, transform_indices = @transform_4, window_bounds = array<i64: 1, 64>}, {pipeline_mode = #tpu.pipeline_mode<synchronous>, transform_indices = @transform_5, window_bounds = array<i64: 64, 32>}, {pipeline_mode = #tpu.pipeline_mode<synchronous>, transform_indices = @transform_6, window_bounds = array<i64: 1, 32>}, {transform_indices = @transform_7, window_bounds = array<i64: 256, 32>}]} {
    %c0 = arith.constant 0 : index
    %c0_0 = arith.constant 0 : index
    %0 = vector.load %arg1[%c0, %c0_0] : memref<256x32xf32, #tpu.memory_space<vmem>>, vector<256x32xf32>
    %cst = arith.constant dense<0.000000e+00> : vector<256xf32>
    %1 = vector.multi_reduction <add>, %0, %cst [1] : vector<256x32xf32> to vector<256xf32>
    %2 = vector.shape_cast %1 : vector<256xf32> to vector<256x1xf32>
    %cst_1 = arith.constant 3.200000e+01 : f32
    %3 = vector.broadcast %cst_1 : f32 to vector<256x1xf32>
    %4 = arith.divf %2, %3 : vector<256x1xf32>
    %5 = vector.broadcast %4 : vector<256x1xf32> to vector<256x32xf32>
    %6 = arith.subf %0, %5 : vector<256x32xf32>
    %7 = arith.mulf %6, %6 : vector<256x32xf32>
    %cst_2 = arith.constant dense<0.000000e+00> : vector<256xf32>
    %8 = vector.multi_reduction <add>, %7, %cst_2 [1] : vector<256x32xf32> to vector<256xf32>
    %9 = vector.shape_cast %8 : vector<256xf32> to vector<256x1xf32>
    %cst_3 = arith.constant 3.200000e+01 : f32
    %10 = vector.broadcast %cst_3 : f32 to vector<256x1xf32>
    %11 = arith.divf %9, %10 : vector<256x1xf32>
    %cst_4 = arith.constant 9.99999997E-7 : f32
    %12 = vector.broadcast %cst_4 : f32 to vector<256x1xf32>
    %13 = arith.addf %11, %12 : vector<256x1xf32>
    %14 = math.rsqrt %13 : vector<256x1xf32>
    %15 = vector.broadcast %14 : vector<256x1xf32> to vector<256x32xf32>
    %16 = arith.mulf %6, %15 : vector<256x32xf32>
    %c0_5 = arith.constant 0 : index
    %c0_6 = arith.constant 0 : index
    %17 = vector.load %arg2[%c0_5, %c0_6] : memref<1x32xf32, #tpu.memory_space<vmem>>, vector<1x32xf32>
    %18 = vector.broadcast %17 : vector<1x32xf32> to vector<256x32xf32>
    %19 = arith.mulf %16, %18 : vector<256x32xf32>
    %c0_7 = arith.constant 0 : index
    %c0_8 = arith.constant 0 : index
    %20 = vector.load %arg3[%c0_7, %c0_8] : memref<1x32xf32, #tpu.memory_space<vmem>>, vector<1x32xf32>
    %21 = vector.broadcast %20 : vector<1x32xf32> to vector<256x32xf32>
    %22 = arith.addf %19, %21 : vector<256x32xf32>
    %23 = arith.truncf %22 : vector<256x32xf32> to vector<256x32xbf16>
    %c0_9 = arith.constant 0 : index
    %c0_10 = arith.constant 0 : index
    %24 = vector.load %arg4[%c0_9, %c0_10] : memref<32x64xbf16, #tpu.memory_space<vmem>>, vector<32x64xbf16>
    %cst_11 = arith.constant dense<0.000000e+00> : vector<256x64xf32>
    %25 = tpu.matmul %23, %24, %cst_11 {dimension_numbers = #tpu.dot_dimension_numbers<[1], [0], [0], [1], [0, 0, 1, 1], [], []>} : vector<256x32xbf16>, vector<32x64xbf16>, vector<256x64xf32> -> vector<256x64xf32>
    %c0_12 = arith.constant 0 : index
    %c0_13 = arith.constant 0 : index
    %26 = vector.load %arg5[%c0_12, %c0_13] : memref<1x64xf32, #tpu.memory_space<vmem>>, vector<1x64xf32>
    %27 = vector.broadcast %26 : vector<1x64xf32> to vector<256x64xf32>
    %28 = arith.addf %25, %27 : vector<256x64xf32>
    %cst_14 = arith.constant 5.000000e-01 : f32
    %29 = vector.broadcast %cst_14 : f32 to vector<256x64xf32>
    %30 = arith.mulf %29, %28 : vector<256x64xf32>
    %31 = arith.mulf %28, %28 : vector<256x64xf32>
    %32 = arith.mulf %31, %28 : vector<256x64xf32>
    %cst_15 = arith.constant 4.471500e-02 : f32
    %33 = vector.broadcast %cst_15 : f32 to vector<256x64xf32>
    %34 = arith.mulf %33, %32 : vector<256x64xf32>
    %35 = arith.addf %28, %34 : vector<256x64xf32>
    %cst_16 = arith.constant 0.797884583 : f32
    %36 = vector.broadcast %cst_16 : f32 to vector<256x64xf32>
    %37 = arith.mulf %36, %35 : vector<256x64xf32>
    %38 = math.tanh %37 : vector<256x64xf32>
    %cst_17 = arith.constant 1.000000e+00 : f32
    %39 = vector.broadcast %cst_17 : f32 to vector<256x64xf32>
    %40 = arith.addf %39, %38 : vector<256x64xf32>
    %41 = arith.mulf %30, %40 : vector<256x64xf32>
    %42 = arith.truncf %41 : vector<256x64xf32> to vector<256x64xbf16>
    %c0_18 = arith.constant 0 : index
    %c0_19 = arith.constant 0 : index
    %43 = vector.load %arg6[%c0_18, %c0_19] : memref<64x32xbf16, #tpu.memory_space<vmem>>, vector<64x32xbf16>
    %cst_20 = arith.constant dense<0.000000e+00> : vector<256x32xf32>
    %44 = tpu.matmul %42, %43, %cst_20 {dimension_numbers = #tpu.dot_dimension_numbers<[1], [0], [0], [1], [0, 0, 1, 1], [], []>} : vector<256x64xbf16>, vector<64x32xbf16>, vector<256x32xf32> -> vector<256x32xf32>
    %c0_21 = arith.constant 0 : index
    %c0_22 = arith.constant 0 : index
    %45 = vector.load %arg7[%c0_21, %c0_22] : memref<1x32xf32, #tpu.memory_space<vmem>>, vector<1x32xf32>
    %46 = vector.broadcast %45 : vector<1x32xf32> to vector<256x32xf32>
    %47 = arith.addf %44, %46 : vector<256x32xf32>
    %48 = arith.addf %47, %0 : vector<256x32xf32>
    %c0_23 = arith.constant 0 : index
    %c0_24 = arith.constant 0 : index
    %49 = vector.load %arg8[%c0_23, %c0_24] : memref<256x32xf32, #tpu.memory_space<vmem>>, vector<256x32xf32>
    tpu.vector_store %arg8[%c0_23, %c0_24], %48 {strides = array<i32>} : memref<256x32xf32, #tpu.memory_space<vmem>>, vector<256x32xf32>,
    return
  }
  func.func @transform_0(%arg0: i32) -> (i32, i32) {
    %c0_i32 = arith.constant 0 : i32
    %c0_i32_0 = arith.constant 0 : i32
    return %arg0, %c0_i32 : i32, i32
  }
  func.func @transform_1(%arg0: i32) -> (i32, i32) {
    %c0_i32 = arith.constant 0 : i32
    %c0_i32_0 = arith.constant 0 : i32
    %c0_i32_1 = arith.constant 0 : i32
    return %c0_i32, %c0_i32_0 : i32, i32
  }
  func.func @transform_2(%arg0: i32) -> (i32, i32) {
    %c0_i32 = arith.constant 0 : i32
    %c0_i32_0 = arith.constant 0 : i32
    %c0_i32_1 = arith.constant 0 : i32
    return %c0_i32, %c0_i32_0 : i32, i32
  }
  func.func @transform_3(%arg0: i32) -> (i32, i32) {
    %c0_i32 = arith.constant 0 : i32
    %c0_i32_0 = arith.constant 0 : i32
    %c0_i32_1 = arith.constant 0 : i32
    return %c0_i32, %c0_i32_0 : i32, i32
  }
  func.func @transform_4(%arg0: i32) -> (i32, i32) {
    %c0_i32 = arith.constant 0 : i32
    %c0_i32_0 = arith.constant 0 : i32
    %c0_i32_1 = arith.constant 0 : i32
    return %c0_i32, %c0_i32_0 : i32, i32
  }
  func.func @transform_5(%arg0: i32) -> (i32, i32) {
    %c0_i32 = arith.constant 0 : i32
    %c0_i32_0 = arith.constant 0 : i32
    %c0_i32_1 = arith.constant 0 : i32
    return %c0_i32, %c0_i32_0 : i32, i32
  }
  func.func @transform_6(%arg0: i32) -> (i32, i32) {
    %c0_i32 = arith.constant 0 : i32
    %c0_i32_0 = arith.constant 0 : i32
    %c0_i32_1 = arith.constant 0 : i32
    return %c0_i32, %c0_i32_0 : i32, i32
  }
  func.func @transform_7(%arg0: i32) -> (i32, i32) {
    %c0_i32 = arith.constant 0 : i32
    %c0_i32_0 = arith.constant 0 : i32
    return %arg0, %c0_i32 : i32, i32
  }
}

</mosaic_0001>

<bundles_post_ra>
// kernel: positionwise_ffn.1
= control target key start
LH: loop header
LB: loop body
LE: loop exit
PB: predicated region body
PF: predicated region fallthrough
CT: control target
= control target key end

     0   :  { %vm59_vm0 = vcmask 261120   ;;  %vm1146_vm1 = vcmask 523264   ;;  %s2888_s0 = inlined_call_operand.vmem [shape: f32[256,32], index: 0, kind: input, shape index: {}]   ;;  %s2889_s3 = inlined_call_operand.vmem [shape: bf16[32,64], index: 3, kind: input, shape index: {}]   ;;  %s2890_s1 = inlined_call_operand.vmem [shape: f32[1,32], index: 1, kind: input, shape index: {}]   ;;  %s2891_s2 = inlined_call_operand.vmem [shape: f32[1,32], index: 2, kind: input, shape index: {}]   ;;  %s2892_s5 = inlined_call_operand.vmem [shape: bf16[64,32], index: 5, kind: input, shape index: {}]   ;;  %s2893_s4 = inlined_call_operand.vmem [shape: f32[1,64], index: 4, kind: input, shape index: {}]   ;;  %s2894_s6 = inlined_call_operand.vmem [shape: f32[1,32], index: 6, kind: input, shape index: {}]   ;;  %s2895_s7 = inlined_call_operand.vmem [shape: f32[256,32], index: 7, kind: output, shape index: {}]  }
   0x1   :  { %v1789_v0 = vld [vmem:[%s2888_s0] sm:$0xff]  ;;  %v1794_v1 = vld [vmem:[%s2888_s0 + $0x10] sm:$0xff]  ;;  %v1799_v2 = vld [vmem:[%s2888_s0 + $0x8] sm:$0xff] }
   0x2   :  { %v60_v3 = vsel %vm59_vm0, %v1789_v0, 0.0  ;;  %v66_v4 = vsel %vm59_vm0, %v1794_v1, 0.0  ;;  %v1808_v5 = vld [vmem:[%s2888_s0 + $0x18] sm:$0xff]  ;;  %v63_v6 = vsel %vm59_vm0, %v1799_v2, 0.0  ;;  %v1817_v8 = vld [vmem:[%s2888_s0 + $0x20] sm:$0xff]  ;;  %v1822_v9 = vld [vmem:[%s2888_s0 + $0x28] sm:$0xff] }
   0x3   :  { %61 = vadd.xlane.f32.xlu0 %v60_v3  ;;  %67 = vadd.xlane.f32.xlu1 %v66_v4  ;;  %v69_v7 = vsel %vm59_vm0, %v1808_v5, 0.0  ;;  %v72_v10 = vsel %vm59_vm0, %v1817_v8, 0.0  ;;  %v75_v11 = vsel %vm59_vm0, %v1822_v9, 0.0  ;;  %v1831_v12 = vld [vmem:[%s2888_s0 + $0x30] sm:$0xff]  ;;  %v1836_v13 = vld [vmem:[%s2888_s0 + $0x38] sm:$0xff]  ;;  %v1845_v16 = vld [vmem:[%s2888_s0 + $0x40] sm:$0xff] }
   0x4   :  { %v78_v14 = vsel %vm59_vm0, %v1831_v12, 0.0  ;;  %v81_v15 = vsel %vm59_vm0, %v1836_v13, 0.0  ;;  %v1850_v17 = vld [vmem:[%s2888_s0 + $0x48] sm:$0xff]  ;;  %v84_v18 = vsel %vm59_vm0, %v1845_v16, 0.0  ;;  %v1859_v20 = vld [vmem:[%s2888_s0 + $0x50] sm:$0xff]  ;;  %v1864_v21 = vld [vmem:[%s2888_s0 + $0x58] sm:$0xff] }
   0x5   :  { %v87_v19 = vsel %vm59_vm0, %v1850_v17, 0.0  ;;  %v90_v22 = vsel %vm59_vm0, %v1859_v20, 0.0  ;;  %v93_v23 = vsel %vm59_vm0, %v1864_v21, 0.0  ;;  %v1873_v24 = vld [vmem:[%s2888_s0 + $0x60] sm:$0xff]  ;;  %v1878_v25 = vld [vmem:[%s2888_s0 + $0x68] sm:$0xff]  ;;  %v1887_v28 = vld [vmem:[%s2888_s0 + $0x70] sm:$0xff] }
   0x6   :  { %v96_v26 = vsel %vm59_vm0, %v1873_v24, 0.0  ;;  %v99_v27 = vsel %vm59_vm0, %v1878_v25, 0.0  ;;  %v1892_v29 = vld [vmem:[%s2888_s0 + $0x78] sm:$0xff]  ;;  %v102_v30 = vsel %vm59_vm0, %v1887_v28, 0.0  ;;  %v1901_v32 = vld [vmem:[%s2888_s0 + $0x80] sm:$0xff]  ;;  %v1906_v33 = vld [vmem:[%s2888_s0 + $0x88] sm:$0xff] }
   0x7   :  { %64 = vadd.xlane.f32.xlu0 %v63_v6  ;;  %70 = vadd.xlane.f32.xlu1 %v69_v7  ;;  %v105_v31 = vsel %vm59_vm0, %v1892_v29, 0.0  ;;  %v108_v34 = vsel %vm59_vm0, %v1901_v32, 0.0  ;;  %v111_v35 = vsel %vm59_vm0, %v1906_v33, 0.0  ;;  %v1915_v36 = vld [vmem:[%s2888_s0 + $0x90] sm:$0xff]  ;;  %v1920_v37 = vld [vmem:[%s2888_s0 + $0x98] sm:$0xff]  ;;  %v1929_v40 = vld [vmem:[%s2888_s0 + $0xa0] sm:$0xff] }
   0x8   :  { %v114_v38 = vsel %vm59_vm0, %v1915_v36, 0.0  ;;  %v117_v39 = vsel %vm59_vm0, %v1920_v37, 0.0  ;;  %v1934_v41 = vld [vmem:[%s2888_s0 + $0xa8] sm:$0xff]  ;;  %v120_v42 = vsel %vm59_vm0, %v1929_v40, 0.0  ;;  %v1943_v44 = vld [vmem:[%s2888_s0 + $0xb0] sm:$0xff]  ;;  %v1948_v45 = vld [vmem:[%s2888_s0 + $0xb8] sm:$0xff] }
   0x9   :  { %v123_v43 = vsel %vm59_vm0, %v1934_v41, 0.0  ;;  %v126_v46 = vsel %vm59_vm0, %v1943_v44, 0.0  ;;  %v129_v47 = vsel %vm59_vm0, %v1948_v45, 0.0  ;;  %v1957_v48 = vld [vmem:[%s2888_s0 + $0xc0] sm:$0xff]  ;;  %v1962_v49 = vld [vmem:[%s2888_s0 + $0xc8] sm:$0xff]  ;;  %v1971_v52 = vld [vmem:[%s2888_s0 + $0xd0] sm:$0xff] }
   0xa   :  { %v132_v50 = vsel %vm59_vm0, %v1957_v48, 0.0  ;;  %v135_v51 = vsel %vm59_vm0, %v1962_v49, 0.0  ;;  %v1976_v53 = vld [vmem:[%s2888_s0 + $0xd8] sm:$0xff]  ;;  %v138_v54 = vsel %vm59_vm0, %v1971_v52, 0.0  ;;  %v1985_v56 = vld [vmem:[%s2888_s0 + $0xe0] sm:$0xff]  ;;  %v1990_v57 = vld [vmem:[%s2888_s0 + $0xe8] sm:$0xff] }
   0xb   :  { %73 = vadd.xlane.f32.xlu0 %v72_v10  ;;  %76 = vadd.xlane.f32.xlu1 %v75_v11  ;;  %v141_v55 = vsel %vm59_vm0, %v1976_v53, 0.0  ;;  %v144_v58 = vsel %vm59_vm0, %v1985_v56, 0.0  ;;  %v147_v59 = vsel %vm59_vm0, %v1990_v57, 0.0  ;;  %v1999_v60 = vld [vmem:[%s2888_s0 + $0xf0] sm:$0xff]  ;;  %v2004_v61 = vld [vmem:[%s2888_s0 + $0xf8] sm:$0xff] }
   0xc   :  { %v150_v62 = vsel %vm59_vm0, %v1999_v60, 0.0  ;;  %v153_v63 = vsel %vm59_vm0, %v2004_v61, 0.0 }
   0xf   :  { %79 = vadd.xlane.f32.xlu0 %v78_v14  ;;  %82 = vadd.xlane.f32.xlu1 %v81_v15 }
  0x13   :  { %85 = vadd.xlane.f32.xlu0 %v84_v18  ;;  %88 = vadd.xlane.f32.xlu1 %v87_v19 }
  0x17   :  { %91 = vadd.xlane.f32.xlu0 %v90_v22  ;;  %94 = vadd.xlane.f32.xlu1 %v93_v23 }
  0x1b   :  { %97 = vadd.xlane.f32.xlu0 %v96_v26  ;;  %100 = vadd.xlane.f32.xlu1 %v99_v27 }
  0x1f   :  { %103 = vadd.xlane.f32.xlu0 %v102_v30  ;;  %106 = vadd.xlane.f32.xlu1 %v105_v31 }
  0x23   :  { %109 = vadd.xlane.f32.xlu0 %v108_v34  ;;  %112 = vadd.xlane.f32.xlu1 %v111_v35 }
  0x27   :  { %115 = vadd.xlane.f32.xlu0 %v114_v38  ;;  %118 = vadd.xlane.f32.xlu1 %v117_v39 }
  0x2b   :  { %121 = vadd.xlane.f32.xlu0 %v120_v42  ;;  %124 = vadd.xlane.f32.xlu1 %v123_v43 }
  0x2f   :  { %127 = vadd.xlane.f32.xlu0 %v126_v46  ;;  %130 = vadd.xlane.f32.xlu1 %v129_v47 }
  0x33   :  { %133 = vadd.xlane.f32.xlu0 %v132_v50  ;;  %136 = vadd.xlane.f32.xlu1 %v135_v51 }
  0x37   :  { %139 = vadd.xlane.f32.xlu0 %v138_v54  ;;  %142 = vadd.xlane.f32.xlu1 %v141_v55 }
  0x3b   :  { %145 = vadd.xlane.f32.xlu0 %v144_v58  ;;  %148 = vadd.xlane.f32.xlu1 %v147_v59 }
  0x3f   :  { %151 = vadd.xlane.f32.xlu0 %v150_v62  ;;  %154 = vadd.xlane.f32.xlu1 %v153_v63 }
  0x8c   :  { %v62_v3 = vpop.xlane.xlu0 %61  ;;  %v68_v4 = vpop.xlane.xlu1 %67 }
  0x8d   :  { %v157_v6 = vmul.f32 0.03125, %v62_v3  ;;  %v159_v7 = vmul.f32 0.03125, %v68_v4 }
  0x8f   :  { %v2011_v10 = vsub.f32 %v1789_v0, %v157_v6  ;;  %v2014_v11 = vsub.f32 %v1794_v1, %v159_v7 }
  0x90   :  { %v65_v14 = vpop.xlane.xlu0 %64  ;;  %v71_v15 = vpop.xlane.xlu1 %70 }
  0x91   :  { %v158_v18 = vmul.f32 0.03125, %v65_v14  ;;  %v160_v19 = vmul.f32 0.03125, %v71_v15  ;;  %v221_v22 = vmul.f32 %v2011_v10, %v2011_v10  ;;  %v223_v23 = vmul.f32 %v2014_v11, %v2014_v11 }
  0x93   :  { %v2021_v26 = vsub.f32 %v1799_v2, %v158_v18  ;;  %v2024_v27 = vsub.f32 %v1808_v5, %v160_v19  ;;  %v253_v0 = vsel %vm59_vm0, %v221_v22, 0.0  ;;  %v259_v31 = vsel %vm59_vm0, %v223_v23, 0.0 }
  0x94   :  { %254 = vadd.xlane.f32.xlu0 %v253_v0  ;;  %v74_v1 = vpop.xlane.xlu0 %73  ;;  %v77_v30 = vpop.xlane.xlu1 %76 }
  0x95   :  { %v161_v34 = vmul.f32 0.03125, %v74_v1  ;;  %v162_v35 = vmul.f32 0.03125, %v77_v30  ;;  %v222_v38 = vmul.f32 %v2021_v26, %v2021_v26  ;;  %v224_v39 = vmul.f32 %v2024_v27, %v2024_v27 }
  0x97   :  { %v2033_v2 = vsub.f32 %v1817_v8, %v161_v34  ;;  %v2036_v5 = vsub.f32 %v1822_v9, %v162_v35  ;;  %v256_v42 = vsel %vm59_vm0, %v222_v38, 0.0  ;;  %v262_v47 = vsel %vm59_vm0, %v224_v39, 0.0 }
  0x98   :  { %260 = vadd.xlane.f32.xlu0 %v259_v31  ;;  %257 = vadd.xlane.f32.xlu1 %v256_v42  ;;  %v80_v43 = vpop.xlane.xlu0 %79  ;;  %v83_v46 = vpop.xlane.xlu1 %82 }
  0x99   :  { %v163_v50 = vmul.f32 0.03125, %v80_v43  ;;  %v164_v51 = vmul.f32 0.03125, %v83_v46  ;;  %v225_v54 = vmul.f32 %v2033_v2, %v2033_v2  ;;  %v226_v8 = vmul.f32 %v2036_v5, %v2036_v5 }
  0x9b   :  { %v2045_v55 = vsub.f32 %v1831_v12, %v163_v50  ;;  %v2048_v9 = vsub.f32 %v1836_v13, %v164_v51  ;;  %v265_v58 = vsel %vm59_vm0, %v225_v54, 0.0  ;;  %v268_v63 = vsel %vm59_vm0, %v226_v8, 0.0 }
  0x9c   :  { %263 = vadd.xlane.f32.xlu1 %v262_v47  ;;  %266 = vadd.xlane.f32.xlu0 %v265_v58  ;;  %v86_v59 = vpop.xlane.xlu0 %85  ;;  %v89_v62 = vpop.xlane.xlu1 %88 }
  0x9d   :  { %v165_v3 = vmul.f32 0.03125, %v86_v59  ;;  %v166_v4 = vmul.f32 0.03125, %v89_v62  ;;  %v227_v6 = vmul.f32 %v2045_v55, %v2045_v55  ;;  %v228_v12 = vmul.f32 %v2048_v9, %v2048_v9 }
  0x9f   :  { %v2057_v7 = vsub.f32 %v1845_v16, %v165_v3  ;;  %v2060_v13 = vsub.f32 %v1850_v17, %v166_v4  ;;  %v271_v14 = vsel %vm59_vm0, %v227_v6, 0.0  ;;  %v274_v19 = vsel %vm59_vm0, %v228_v12, 0.0 }
  0xa0   :  { %269 = vadd.xlane.f32.xlu1 %v268_v63  ;;  %272 = vadd.xlane.f32.xlu0 %v271_v14  ;;  %v92_v15 = vpop.xlane.xlu0 %91  ;;  %v95_v18 = vpop.xlane.xlu1 %94 }
  0xa1   :  { %v167_v22 = vmul.f32 0.03125, %v92_v15  ;;  %v168_v23 = vmul.f32 0.03125, %v95_v18  ;;  %v229_v0 = vmul.f32 %v2057_v7, %v2057_v7  ;;  %v230_v16 = vmul.f32 %v2060_v13, %v2060_v13 }
  0xa3   :  { %v2069_v1 = vsub.f32 %v1859_v20, %v167_v22  ;;  %v2072_v17 = vsub.f32 %v1864_v21, %v168_v23  ;;  %v277_v30 = vsel %vm59_vm0, %v229_v0, 0.0  ;;  %v280_v35 = vsel %vm59_vm0, %v230_v16, 0.0 }
  0xa4   :  { %275 = vadd.xlane.f32.xlu1 %v274_v19  ;;  %278 = vadd.xlane.f32.xlu0 %v277_v30  ;;  %v98_v31 = vpop.xlane.xlu0 %97  ;;  %v101_v34 = vpop.xlane.xlu1 %100 }
  0xa5   :  { %v169_v38 = vmul.f32 0.03125, %v98_v31  ;;  %v170_v39 = vmul.f32 0.03125, %v101_v34  ;;  %v231_v42 = vmul.f32 %v2069_v1, %v2069_v1  ;;  %v232_v20 = vmul.f32 %v2072_v17, %v2072_v17 }
  0xa7   :  { %v2081_v43 = vsub.f32 %v1873_v24, %v169_v38  ;;  %v2084_v21 = vsub.f32 %v1878_v25, %v170_v39  ;;  %v283_v46 = vsel %vm59_vm0, %v231_v42, 0.0  ;;  %v286_v51 = vsel %vm59_vm0, %v232_v20, 0.0 }
  0xa8   :  { %281 = vadd.xlane.f32.xlu1 %v280_v35  ;;  %284 = vadd.xlane.f32.xlu0 %v283_v46  ;;  %v104_v47 = vpop.xlane.xlu0 %103  ;;  %v107_v50 = vpop.xlane.xlu1 %106 }
  0xa9   :  { %v171_v54 = vmul.f32 0.03125, %v104_v47  ;;  %v172_v8 = vmul.f32 0.03125, %v107_v50  ;;  %v233_v58 = vmul.f32 %v2081_v43, %v2081_v43  ;;  %v234_v24 = vmul.f32 %v2084_v21, %v2084_v21 }
  0xab   :  { %v2093_v59 = vsub.f32 %v1887_v28, %v171_v54  ;;  %v2096_v25 = vsub.f32 %v1892_v29, %v172_v8  ;;  %v289_v62 = vsel %vm59_vm0, %v233_v58, 0.0  ;;  %v292_v4 = vsel %vm59_vm0, %v234_v24, 0.0  ;;  %v1580_v58 = vld [vmem:[%s2889_s3 + $0x8] sm:$0xff]  }
  0xac   :  { %287 = vadd.xlane.f32.xlu1 %v286_v51  ;;  %290 = vadd.xlane.f32.xlu0 %v289_v62  ;;  %v110_v63 = vpop.xlane.xlu0 %109  ;;  %v113_v3 = vpop.xlane.xlu1 %112 }
  0xad   :  { %v173_v6 = vmul.f32 0.03125, %v110_v63  ;;  %v174_v12 = vmul.f32 0.03125, %v113_v3  ;;  %v235_v14 = vmul.f32 %v2093_v59, %v2093_v59  ;;  %v236_v28 = vmul.f32 %v2096_v25, %v2096_v25  ;;  %1504 = vmatprep.subr.bf16.mxu0 %v1580_v58 }
  0xae   :  { %1505 = vmatpush3.bf16.msra.mxu0 %v1580_v58 }
  0xaf   :  { %v2105_v15 = vsub.f32 %v1901_v32, %v173_v6  ;;  %v2108_v29 = vsub.f32 %v1906_v33, %v174_v12  ;;  %v295_v18 = vsel %vm59_vm0, %v235_v14, 0.0  ;;  %v298_v23 = vsel %vm59_vm0, %v236_v28, 0.0  ;;  %v1581_v6 = vld [vmem:[%s2889_s3] sm:$0xff]  }
  0xb0   :  { %293 = vadd.xlane.f32.xlu1 %v292_v4  ;;  %296 = vadd.xlane.f32.xlu0 %v295_v18  ;;  %v116_v19 = vpop.xlane.xlu0 %115  ;;  %v119_v22 = vpop.xlane.xlu1 %118 }
  0xb1   :  { %v175_v0 = vmul.f32 0.03125, %v116_v19  ;;  %v176_v16 = vmul.f32 0.03125, %v119_v22  ;;  %v237_v30 = vmul.f32 %v2105_v15, %v2105_v15  ;;  %v238_v32 = vmul.f32 %v2108_v29, %v2108_v29  ;;  %1506 = vmatprep.subr.bf16.mxu0 %v1581_v6 }
  0xb2   :  { %1507 = vmatpush3.bf16.msra.mxu0 %v1581_v6 }
  0xb3   :  { %v2117_v31 = vsub.f32 %v1915_v36, %v175_v0  ;;  %v2120_v33 = vsub.f32 %v1920_v37, %v176_v16  ;;  %v301_v34 = vsel %vm59_vm0, %v237_v30, 0.0  ;;  %v304_v39 = vsel %vm59_vm0, %v238_v32, 0.0 }
  0xb4   :  { %299 = vadd.xlane.f32.xlu1 %v298_v23  ;;  %302 = vadd.xlane.f32.xlu0 %v301_v34  ;;  %v122_v35 = vpop.xlane.xlu0 %121  ;;  %v125_v38 = vpop.xlane.xlu1 %124 }
  0xb5   :  { %v177_v42 = vmul.f32 0.03125, %v122_v35  ;;  %v178_v20 = vmul.f32 0.03125, %v125_v38  ;;  %v239_v46 = vmul.f32 %v2117_v31, %v2117_v31  ;;  %v240_v36 = vmul.f32 %v2120_v33, %v2120_v33 }
  0xb7   :  { %v2129_v47 = vsub.f32 %v1929_v40, %v177_v42  ;;  %v2132_v37 = vsub.f32 %v1934_v41, %v178_v20  ;;  %v307_v50 = vsel %vm59_vm0, %v239_v46, 0.0  ;;  %v310_v8 = vsel %vm59_vm0, %v240_v36, 0.0 }
  0xb8   :  { %305 = vadd.xlane.f32.xlu1 %v304_v39  ;;  %308 = vadd.xlane.f32.xlu0 %v307_v50  ;;  %v128_v51 = vpop.xlane.xlu0 %127  ;;  %v131_v54 = vpop.xlane.xlu1 %130 }
  0xb9   :  { %v179_v24 = vmul.f32 0.03125, %v128_v51  ;;  %v180_v62 = vmul.f32 0.03125, %v131_v54  ;;  %v241_v40 = vmul.f32 %v2129_v47, %v2129_v47  ;;  %v242_v41 = vmul.f32 %v2132_v37, %v2132_v37 }
  0xbb   :  { %v2144_v63 = vsub.f32 %v1943_v44, %v179_v24  ;;  %v2147_v3 = vsub.f32 %v1948_v45, %v180_v62  ;;  %v313_v4 = vsel %vm59_vm0, %v241_v40, 0.0  ;;  %v316_v28 = vsel %vm59_vm0, %v242_v41, 0.0 }
  0xbc   :  { %311 = vadd.xlane.f32.xlu1 %v310_v8  ;;  %314 = vadd.xlane.f32.xlu0 %v313_v4  ;;  %v134_v12 = vpop.xlane.xlu0 %133  ;;  %v137_v14 = vpop.xlane.xlu1 %136 }
  0xbd   :  { %v181_v18 = vmul.f32 0.03125, %v134_v12  ;;  %v182_v19 = vmul.f32 0.03125, %v137_v14  ;;  %v243_v44 = vmul.f32 %v2144_v63, %v2144_v63  ;;  %v244_v45 = vmul.f32 %v2147_v3, %v2147_v3 }
  0xbf   :  { %v2159_v22 = vsub.f32 %v1957_v48, %v181_v18  ;;  %v2162_v23 = vsub.f32 %v1962_v49, %v182_v19  ;;  %v319_v0 = vsel %vm59_vm0, %v243_v44, 0.0  ;;  %v322_v32 = vsel %vm59_vm0, %v244_v45, 0.0 }
  0xc0   :  { %317 = vadd.xlane.f32.xlu1 %v316_v28  ;;  %320 = vadd.xlane.f32.xlu0 %v319_v0  ;;  %v140_v16 = vpop.xlane.xlu0 %139  ;;  %v143_v30 = vpop.xlane.xlu1 %142 }
  0xc1   :  { %v183_v34 = vmul.f32 0.03125, %v140_v16  ;;  %v184_v35 = vmul.f32 0.03125, %v143_v30  ;;  %v245_v38 = vmul.f32 %v2159_v22, %v2159_v22  ;;  %v246_v48 = vmul.f32 %v2162_v23, %v2162_v23 }
  0xc3   :  { %v2171_v49 = vsub.f32 %v1971_v52, %v183_v34  ;;  %v2174_v39 = vsub.f32 %v1976_v53, %v184_v35  ;;  %v325_v42 = vsel %vm59_vm0, %v245_v38, 0.0  ;;  %v328_v36 = vsel %vm59_vm0, %v246_v48, 0.0 }
  0xc4   :  { %323 = vadd.xlane.f32.xlu1 %v322_v32  ;;  %326 = vadd.xlane.f32.xlu0 %v325_v42  ;;  %v146_v20 = vpop.xlane.xlu0 %145  ;;  %v149_v46 = vpop.xlane.xlu1 %148 }
  0xc5   :  { %v185_v50 = vmul.f32 0.03125, %v146_v20  ;;  %v186_v51 = vmul.f32 0.03125, %v149_v46  ;;  %v247_v54 = vmul.f32 %v2171_v49, %v2171_v49  ;;  %v248_v52 = vmul.f32 %v2174_v39, %v2174_v39 }
  0xc7   :  { %v2183_v8 = vsub.f32 %v1985_v56, %v185_v50  ;;  %v2186_v53 = vsub.f32 %v1990_v57, %v186_v51  ;;  %v331_v58 = vsel %vm59_vm0, %v247_v54, 0.0  ;;  %v334_v40 = vsel %vm59_vm0, %v248_v52, 0.0 }
  0xc8   :  { %329 = vadd.xlane.f32.xlu1 %v328_v36  ;;  %332 = vadd.xlane.f32.xlu0 %v331_v58  ;;  %v152_v24 = vpop.xlane.xlu0 %151  ;;  %v155_v62 = vpop.xlane.xlu1 %154 }
  0xc9   :  { %v187_v41 = vmul.f32 0.03125, %v152_v24  ;;  %v188_v4 = vmul.f32 0.03125, %v155_v62  ;;  %v249_v6 = vmul.f32 %v2183_v8, %v2183_v8  ;;  %v250_v56 = vmul.f32 %v2186_v53, %v2186_v53 }
  0xcb   :  { %v2195_v12 = vsub.f32 %v1999_v60, %v187_v41  ;;  %v2198_v57 = vsub.f32 %v2004_v61, %v188_v4  ;;  %v337_v14 = vsel %vm59_vm0, %v249_v6, 0.0  ;;  %v340_v28 = vsel %vm59_vm0, %v250_v56, 0.0 }
  0xcc   :  { %335 = vadd.xlane.f32.xlu1 %v334_v40  ;;  %338 = vadd.xlane.f32.xlu0 %v337_v14 }
  0xcd   :  { %v251_v18 = vmul.f32 %v2195_v12, %v2195_v12  ;;  %v252_v19 = vmul.f32 %v2198_v57, %v2198_v57 }
  0xcf   :  { %v343_v44 = vsel %vm59_vm0, %v251_v18, 0.0  ;;  %v346_v60 = vsel %vm59_vm0, %v252_v19, 0.0  ;;  %v2212_v19 = vld [vmem:[%s2890_s1] ss:$0 sm:$0xff] }
  0xd0   :  { %341 = vadd.xlane.f32.xlu1 %v340_v28  ;;  %344 = vadd.xlane.f32.xlu0 %v343_v44 }
  0xd4   :  { %347 = vadd.xlane.f32.xlu1 %v346_v60 }
 0x11d   :  { %v255_v61 = vpop.xlane.xlu0 %254 }
 0x11e   :  { %v349_v45 = vmul.f32 0.03125, %v255_v61 }
 0x120   :  { %v381_v0 = vadd.f32 1e-06, %v349_v45 }
 0x121   :  { %v258_v16 = vpop.xlane.xlu1 %257  ;;  %v261_v30 = vpop.xlane.xlu0 %260 }
 0x122   :  { %1586 = vrsqrt.f32 %v381_v0  ;;  %v350_v32 = vmul.f32 0.03125, %v258_v16  ;;  %v351_v34 = vmul.f32 0.03125, %v261_v30 }
 0x124   :  { %v382_v35 = vadd.f32 1e-06, %v350_v32  ;;  %v383_v38 = vadd.f32 1e-06, %v351_v34 }
 0x125   :  { %v264_v48 = vpop.xlane.xlu1 %263  ;;  %v267_v42 = vpop.xlane.xlu0 %266 }
 0x126   :  { %1588 = vrsqrt.f32 %v382_v35  ;;  %v352_v20 = vmul.f32 0.03125, %v264_v48  ;;  %v353_v46 = vmul.f32 0.03125, %v267_v42 }
 0x127   :  { %1590 = vrsqrt.f32 %v383_v38 }
 0x128   :  { %v384_v36 = vadd.f32 1e-06, %v352_v20  ;;  %v385_v50 = vadd.f32 1e-06, %v353_v46 }
 0x129   :  { %v270_v51 = vpop.xlane.xlu1 %269  ;;  %v273_v54 = vpop.xlane.xlu0 %272 }
 0x12a   :  { %1592 = vrsqrt.f32 %v384_v36  ;;  %v354_v52 = vmul.f32 0.03125, %v270_v51  ;;  %v355_v58 = vmul.f32 0.03125, %v273_v54 }
 0x12b   :  { %1594 = vrsqrt.f32 %v385_v50 }
 0x12c   :  { %v386_v24 = vadd.f32 1e-06, %v354_v52  ;;  %v387_v62 = vadd.f32 1e-06, %v355_v58 }
 0x12d   :  { %v276_v40 = vpop.xlane.xlu1 %275  ;;  %v279_v41 = vpop.xlane.xlu0 %278 }
 0x12e   :  { %1596 = vrsqrt.f32 %v386_v24  ;;  %v356_v4 = vmul.f32 0.03125, %v276_v40  ;;  %v357_v6 = vmul.f32 0.03125, %v279_v41 }
 0x12f   :  { %v1587_v56 = vpop.eup %1586  ;;  %1598 = vrsqrt.f32 %v387_v62 }
 0x130   :  { %v388_v14 = vadd.f32 1e-06, %v356_v4  ;;  %v389_v28 = vadd.f32 1e-06, %v357_v6  ;;  %v445_v18 = vmul.f32 %v1587_v56, %v2011_v10  ;;  %v2219_v10 = vld [vmem:[%s2891_s2] ss:$0 sm:$0xff] }
 0x131   :  { %v282_v44 = vpop.xlane.xlu1 %281  ;;  %v285_v60 = vpop.xlane.xlu0 %284 }
 0x132   :  { %1600 = vrsqrt.f32 %v388_v14  ;;  %v358_v61 = vmul.f32 0.03125, %v282_v44  ;;  %v359_v45 = vmul.f32 0.03125, %v285_v60  ;;  %v484_v16 = vmul.f32 %v2212_v19, %v445_v18 }
 0x133   :  { %v1589_v0 = vpop.eup %1588  ;;  %1602 = vrsqrt.f32 %v389_v28 }
 0x134   :  { %v1591_v30 = vpop.eup %1590  ;;  %v390_v32 = vadd.f32 1e-06, %v358_v61  ;;  %v391_v34 = vadd.f32 1e-06, %v359_v45  ;;  %v446_v35 = vmul.f32 %v1589_v0, %v2021_v26  ;;  %v523_v51 = vadd.f32 %v2219_v10, %v484_v16 }
 0x135   :  { %v288_v38 = vpop.xlane.xlu1 %287  ;;  %v291_v48 = vpop.xlane.xlu0 %290  ;;  %v447_v42 = vmul.f32 %v1591_v30, %v2014_v11 }
 0x136   :  { %1604 = vrsqrt.f32 %v390_v32  ;;  %v360_v20 = vmul.f32 0.03125, %v288_v38  ;;  %v361_v46 = vmul.f32 0.03125, %v291_v48  ;;  %v485_v36 = vmul.f32 %v2212_v19, %v446_v35 }
 0x137   :  { %v1593_v50 = vpop.eup %1592  ;;  %1606 = vrsqrt.f32 %v391_v34  ;;  %v486_v11 = vmul.f32 %v2212_v19, %v447_v42 }
 0x138   :  { %v1595_v54 = vpop.eup %1594  ;;  %v392_v26 = vadd.f32 1e-06, %v360_v20  ;;  %v393_v52 = vadd.f32 1e-06, %v361_v46  ;;  %v524_v58 = vadd.f32 %v2219_v10, %v485_v36  ;;  %v448_v24 = vmul.f32 %v1593_v50, %v2024_v27 }
 0x139   :  { %v294_v62 = vpop.xlane.xlu1 %293  ;;  %v297_v40 = vpop.xlane.xlu0 %296  ;;  %v449_v41 = vmul.f32 %v1595_v54, %v2033_v2  ;;  %v525_v2 = vadd.f32 %v2219_v10, %v486_v11 }
 0x13a   :  { %1608 = vrsqrt.f32 %v392_v26  ;;  %v362_v4 = vmul.f32 0.03125, %v294_v62  ;;  %v363_v6 = vmul.f32 0.03125, %v297_v40  ;;  %v555_v56 = vpack.c.bf16 %v524_v58, %v523_v51 }
 0x13b   :  { %v1597_v14 = vpop.eup %1596  ;;  %1610 = vrsqrt.f32 %v393_v52  ;;  %v487_v28 = vmul.f32 %v2212_v19, %v448_v24  ;;  %v488_v18 = vmul.f32 %v2212_v19, %v449_v41 }
 0x13c   :  { %v1599_v44 = vpop.eup %1598  ;;  %v394_v60 = vadd.f32 1e-06, %v362_v4  ;;  %v395_v61 = vadd.f32 1e-06, %v363_v6  ;;  %1508 = vmatprep.mubr.msk.bf16.mxu0 %vm59_vm0, %v555_v56  ;;  %v450_v27 = vmul.f32 %v1597_v14, %v2036_v5 }
 0x13d   :  { %v300_v45 = vpop.xlane.xlu1 %299  ;;  %v303_v0 = vpop.xlane.xlu0 %302  ;;  %v526_v16 = vadd.f32 %v2219_v10, %v487_v28  ;;  %v451_v30 = vmul.f32 %v1599_v44, %v2045_v55  ;;  %v527_v42 = vadd.f32 %v2219_v10, %v488_v18 }
 0x13e   :  { %1612 = vrsqrt.f32 %v394_v60  ;;  %v364_v32 = vmul.f32 0.03125, %v300_v45  ;;  %v365_v34 = vmul.f32 0.03125, %v303_v0  ;;  %v489_v35 = vmul.f32 %v2212_v19, %v450_v27 }
 0x13f   :  { %v1601_v38 = vpop.eup %1600  ;;  %1614 = vrsqrt.f32 %v395_v61  ;;  %v556_v48 = vpack.c.bf16 %v526_v16, %v525_v2  ;;  %v490_v54 = vmul.f32 %v2212_v19, %v451_v30 }
 0x140   :  { %v1603_v20 = vpop.eup %1602  ;;  %v396_v5 = vadd.f32 1e-06, %v364_v32  ;;  %v397_v46 = vadd.f32 1e-06, %v365_v34  ;;  %v528_v36 = vadd.f32 %v2219_v10, %v489_v35  ;;  %v452_v50 = vmul.f32 %v1601_v38, %v2048_v9 }
 0x141   :  { %1509 = vmatmul.mubr.msk.bf16.vlgmr.msra.gmra.mxu0 %vm59_vm0, %v556_v48  ;;  %v306_v55 = vpop.xlane.xlu1 %305  ;;  %v309_v51 = vpop.xlane.xlu0 %308  ;;  %v453_v26 = vmul.f32 %v1603_v20, %v2057_v7  ;;  %v529_v7 = vadd.f32 %v2219_v10, %v490_v54 }
 0x142   :  { %1616 = vrsqrt.f32 %v396_v5  ;;  %v366_v52 = vmul.f32 0.03125, %v306_v55  ;;  %v367_v58 = vmul.f32 0.03125, %v309_v51  ;;  %v557_v24 = vpack.c.bf16 %v528_v36, %v527_v42 }
 0x143   :  { %v1605_v62 = vpop.eup %1604  ;;  %1618 = vrsqrt.f32 %v397_v46  ;;  %v491_v40 = vmul.f32 %v2212_v19, %v452_v50  ;;  %v492_v11 = vmul.f32 %v2212_v19, %v453_v26 }
 0x144   :  { %v1607_v41 = vpop.eup %1606  ;;  %v398_v9 = vadd.f32 1e-06, %v366_v52  ;;  %v399_v4 = vadd.f32 1e-06, %v367_v58  ;;  %1512 = vmatprep.mubr.msk.bf16.mxu0 %vm59_vm0, %v557_v24  ;;  %v454_v6 = vmul.f32 %v1605_v62, %v2060_v13 }
 0x145   :  { %v312_v56 = vpop.xlane.xlu1 %311  ;;  %v315_v14 = vpop.xlane.xlu0 %314  ;;  %v530_v28 = vadd.f32 %v2219_v10, %v491_v40  ;;  %v455_v18 = vmul.f32 %v1607_v41, %v2069_v1  ;;  %v531_v0 = vadd.f32 %v2219_v10, %v492_v11 }
 0x146   :  { %1620 = vrsqrt.f32 %v398_v9  ;;  %v368_v44 = vmul.f32 0.03125, %v312_v56  ;;  %v369_v60 = vmul.f32 0.03125, %v315_v14  ;;  %v493_v61 = vmul.f32 %v2212_v19, %v454_v6 }
 0x147   :  { %v1609_v27 = vpop.eup %1608  ;;  %1622 = vrsqrt.f32 %v399_v4  ;;  %v558_v45 = vpack.c.bf16 %v530_v28, %v529_v7  ;;  %v494_v35 = vmul.f32 %v2212_v19, %v455_v18 }
 0x148   :  { %v1611_v2 = vpop.eup %1610  ;;  %v400_v13 = vadd.f32 1e-06, %v368_v44  ;;  %v401_v16 = vadd.f32 1e-06, %v369_v60  ;;  %v532_v30 = vadd.f32 %v2219_v10, %v493_v61  ;;  %v456_v32 = vmul.f32 %v1609_v27, %v2072_v17 }
 0x149   :  { %1513 = vmatmul.mubr.msk.bf16.gmra.mxu0 %vm59_vm0, %v558_v45  ;;  %v318_v1 = vpop.xlane.xlu1 %317  ;;  %v321_v34 = vpop.xlane.xlu0 %320  ;;  %v457_v38 = vmul.f32 %v1611_v2, %v2081_v43  ;;  %v533_v43 = vadd.f32 %v2219_v10, %v494_v35 }
 0x14a   :  { %1624 = vrsqrt.f32 %v400_v13  ;;  %v370_v48 = vmul.f32 0.03125, %v318_v1  ;;  %v371_v42 = vmul.f32 0.03125, %v321_v34  ;;  %v559_v20 = vpack.c.bf16 %v532_v30, %v531_v0 }
 0x14b   :  { %v1613_v5 = vpop.eup %1612  ;;  %1626 = vrsqrt.f32 %v401_v16  ;;  %v495_v46 = vmul.f32 %v2212_v19, %v456_v32  ;;  %v496_v36 = vmul.f32 %v2212_v19, %v457_v38 }
 0x14c   :  { %v1615_v50 = vpop.eup %1614  ;;  %v402_v17 = vadd.f32 1e-06, %v370_v48  ;;  %v403_v55 = vadd.f32 1e-06, %v371_v42  ;;  %1516 = vmatprep.mubr.msk.bf16.mxu0 %vm59_vm0, %v559_v20  ;;  %v458_v51 = vmul.f32 %v1613_v5, %v2084_v21 }
 0x14d   :  { %v324_v54 = vpop.xlane.xlu1 %323  ;;  %v327_v26 = vpop.xlane.xlu0 %326  ;;  %v534_v52 = vadd.f32 %v2219_v10, %v495_v46  ;;  %v459_v58 = vmul.f32 %v1615_v50, %v2093_v59  ;;  %v535_v9 = vadd.f32 %v2219_v10, %v496_v36 }
 0x14e   :  { %1628 = vrsqrt.f32 %v402_v17  ;;  %v372_v24 = vmul.f32 0.03125, %v324_v54  ;;  %v373_v62 = vmul.f32 0.03125, %v327_v26  ;;  %v497_v40 = vmul.f32 %v2212_v19, %v458_v51 }
 0x14f   :  { %v1617_v11 = vpop.eup %1616  ;;  %1630 = vrsqrt.f32 %v403_v55  ;;  %v560_v41 = vpack.c.bf16 %v534_v52, %v533_v43  ;;  %v498_v28 = vmul.f32 %v2212_v19, %v459_v58 }
 0x150   :  { %v1619_v4 = vpop.eup %1618  ;;  %v404_v21 = vadd.f32 1e-06, %v372_v24  ;;  %v405_v6 = vadd.f32 1e-06, %v373_v62  ;;  %v536_v56 = vadd.f32 %v2219_v10, %v497_v40  ;;  %v460_v14 = vmul.f32 %v1617_v11, %v2096_v25 }
 0x151   :  { %1517 = vmatmul.mubr.msk.bf16.gmra.mxu0 %vm59_vm0, %v560_v41  ;;  %v330_v59 = vpop.xlane.xlu1 %329  ;;  %v333_v7 = vpop.xlane.xlu0 %332  ;;  %v461_v18 = vmul.f32 %v1619_v4, %v2105_v15  ;;  %v537_v15 = vadd.f32 %v2219_v10, %v498_v28 }
 0x152   :  { %1632 = vrsqrt.f32 %v404_v21  ;;  %v374_v44 = vmul.f32 0.03125, %v330_v59  ;;  %v375_v60 = vmul.f32 0.03125, %v333_v7  ;;  %v561_v61 = vpack.c.bf16 %v536_v56, %v535_v9 }
 0x153   :  { %v1621_v27 = vpop.eup %1620  ;;  %1634 = vrsqrt.f32 %v405_v6  ;;  %v499_v45 = vmul.f32 %v2212_v19, %v460_v14  ;;  %v500_v0 = vmul.f32 %v2212_v19, %v461_v18 }
 0x154   :  { %v1623_v2 = vpop.eup %1622  ;;  %v406_v25 = vadd.f32 1e-06, %v374_v44  ;;  %v407_v13 = vadd.f32 1e-06, %v375_v60  ;;  %1520 = vmatprep.mubr.msk.bf16.mxu0 %vm59_vm0, %v561_v61  ;;  %v462_v16 = vmul.f32 %v1621_v27, %v2108_v29 }
 0x155   :  { %v336_v30 = vpop.xlane.xlu1 %335  ;;  %v339_v32 = vpop.xlane.xlu0 %338  ;;  %v538_v1 = vadd.f32 %v2219_v10, %v499_v45  ;;  %v463_v34 = vmul.f32 %v1623_v2, %v2117_v31  ;;  %v539_v5 = vadd.f32 %v2219_v10, %v500_v0 }
 0x156   :  { %1636 = vrsqrt.f32 %v406_v25  ;;  %v376_v35 = vmul.f32 0.03125, %v336_v30  ;;  %v377_v38 = vmul.f32 0.03125, %v339_v32  ;;  %v501_v48 = vmul.f32 %v2212_v19, %v462_v16 }
 0x157   :  { %v1625_v42 = vpop.eup %1624  ;;  %1638 = vrsqrt.f32 %v407_v13  ;;  %v562_v20 = vpack.c.bf16 %v538_v1, %v537_v15  ;;  %v502_v51 = vmul.f32 %v2212_v19, %v463_v34 }
 0x158   :  { %v1627_v46 = vpop.eup %1626  ;;  %v408_v29 = vadd.f32 1e-06, %v376_v35  ;;  %v409_v36 = vadd.f32 1e-06, %v377_v38  ;;  %v540_v50 = vadd.f32 %v2219_v10, %v501_v48  ;;  %v464_v17 = vmul.f32 %v1625_v42, %v2120_v33 }
 0x159   :  { %1521 = vmatmul.mubr.msk.bf16.gmra.mxu0 %vm59_vm0, %v562_v20  ;;  %v342_v31 = vpop.xlane.xlu1 %341  ;;  %v345_v55 = vpop.xlane.xlu0 %344  ;;  %v465_v54 = vmul.f32 %v1627_v46, %v2129_v47  ;;  %v541_v47 = vadd.f32 %v2219_v10, %v502_v51 }
 0x15a   :  { %1640 = vrsqrt.f32 %v408_v29  ;;  %v378_v26 = vmul.f32 0.03125, %v342_v31  ;;  %v379_v43 = vmul.f32 0.03125, %v345_v55  ;;  %v563_v52 = vpack.c.bf16 %v540_v50, %v539_v5 }
 0x15b   :  { %v1629_v58 = vpop.eup %1628  ;;  %1642 = vrsqrt.f32 %v409_v36  ;;  %v503_v24 = vmul.f32 %v2212_v19, %v464_v17  ;;  %v504_v62 = vmul.f32 %v2212_v19, %v465_v54 }
 0x15c   :  { %v1631_v40 = vpop.eup %1630  ;;  %v410_v33 = vadd.f32 1e-06, %v378_v26  ;;  %v411_v11 = vadd.f32 1e-06, %v379_v43  ;;  %1524 = vmatprep.mubr.msk.bf16.mxu0 %vm59_vm0, %v563_v52  ;;  %v466_v41 = vmul.f32 %v1629_v58, %v2132_v37  ;;  %v1583_v58 = vld [vmem:[%s2892_s5 + $0x10] sm:$0xff]  }
 0x15d   :  { %v348_v9 = vpop.xlane.xlu1 %347  ;;  %v542_v4 = vadd.f32 %v2219_v10, %v503_v24  ;;  %v467_v21 = vmul.f32 %v1631_v40, %v2144_v63  ;;  %v543_v7 = vadd.f32 %v2219_v10, %v504_v62  ;;  %v2345_v62 = vld [vmem:[%s2893_s4] ss:$0 sm:$0xff] }
 0x15e   :  { %1644 = vrsqrt.f32 %v410_v33  ;;  %v380_v6 = vmul.f32 0.03125, %v348_v9  ;;  %v505_v56 = vmul.f32 %v2212_v19, %v466_v41 }
 0x15f   :  { %v1633_v14 = vpop.eup %1632  ;;  %1646 = vrsqrt.f32 %v411_v11  ;;  %v564_v59 = vpack.c.bf16 %v542_v4, %v541_v47  ;;  %v506_v60 = vmul.f32 %v2212_v19, %v467_v21 }
 0x160   :  { %v1635_v28 = vpop.eup %1634  ;;  %v412_v18 = vadd.f32 1e-06, %v380_v6  ;;  %v544_v37 = vadd.f32 %v2219_v10, %v505_v56  ;;  %v468_v44 = vmul.f32 %v1633_v14, %v2147_v3 }
 0x161   :  { %1525 = vmatmul.mubr.msk.bf16.gmra.mxu0 %vm59_vm0, %v564_v59  ;;  %v469_v63 = vmul.f32 %v1635_v28, %v2159_v22  ;;  %v545_v2 = vadd.f32 %v2219_v10, %v506_v60 }
 0x162   :  { %1648 = vrsqrt.f32 %v412_v18  ;;  %v565_v61 = vpack.c.bf16 %v544_v37, %v543_v7  ;;  %v507_v27 = vmul.f32 %v2212_v19, %v468_v44 }
 0x163   :  { %v1637_v45 = vpop.eup %1636  ;;  %v508_v13 = vmul.f32 %v2212_v19, %v469_v63 }
 0x164   :  { %v1639_v0 = vpop.eup %1638  ;;  %1528 = vmatprep.mubr.msk.bf16.mxu0 %vm59_vm0, %v565_v61  ;;  %v546_v25 = vadd.f32 %v2219_v10, %v507_v27  ;;  %v470_v3 = vmul.f32 %v1637_v45, %v2162_v23 }
 0x165   :  { %v471_v16 = vmul.f32 %v1639_v0, %v2171_v49  ;;  %v547_v1 = vadd.f32 %v2219_v10, %v508_v13 }
 0x166   :  { %v566_v30 = vpack.c.bf16 %v546_v25, %v545_v2  ;;  %v509_v22 = vmul.f32 %v2212_v19, %v470_v3 }
 0x167   :  { %v1641_v32 = vpop.eup %1640  ;;  %v510_v38 = vmul.f32 %v2212_v19, %v471_v16 }
 0x168   :  { %v1643_v15 = vpop.eup %1642  ;;  %v548_v34 = vadd.f32 %v2219_v10, %v509_v22  ;;  %v472_v35 = vmul.f32 %v1641_v32, %v2174_v39 }
 0x169   :  { %1529 = vmatmul.mubr.msk.bf16.gmra.mxu0 %vm59_vm0, %v566_v30  ;;  %v473_v23 = vmul.f32 %v1643_v15, %v2183_v8  ;;  %v549_v5 = vadd.f32 %v2219_v10, %v510_v38 }
 0x16a   :  { %v567_v48 = vpack.c.bf16 %v548_v34, %v547_v1  ;;  %v511_v49 = vmul.f32 %v2212_v19, %v472_v35 }
 0x16b   :  { %v1645_v42 = vpop.eup %1644  ;;  %v512_v39 = vmul.f32 %v2212_v19, %v473_v23 }
 0x16c   :  { %v1647_v20 = vpop.eup %1646  ;;  %1532 = vmatprep.mubr.msk.bf16.mxu0 %vm59_vm0, %v567_v48  ;;  %v550_v46 = vadd.f32 %v2219_v10, %v511_v49  ;;  %v474_v29 = vmul.f32 %v1645_v42, %v2186_v53 }
 0x16d   :  { %v475_v36 = vmul.f32 %v1647_v20, %v2195_v12  ;;  %v551_v31 = vadd.f32 %v2219_v10, %v512_v39 }
 0x16e   :  { %v568_v50 = vpack.c.bf16 %v550_v46, %v549_v5  ;;  %v513_v8 = vmul.f32 %v2212_v19, %v474_v29 }
 0x16f   :  { %v1649_v17 = vpop.eup %1648  ;;  %v514_v54 = vmul.f32 %v2212_v19, %v475_v36 }
 0x170   :  { %v552_v55 = vadd.f32 %v2219_v10, %v513_v8  ;;  %v476_v51 = vmul.f32 %v1649_v17, %v2198_v57  ;;  %v1582_v57 = vld [vmem:[%s2892_s5 + $0x18] sm:$0xff]  }
 0x171   :  { %1533 = vmatmul.mubr.msk.bf16.gmra.mxu0 %vm59_vm0, %v568_v50  ;;  %v553_v12 = vadd.f32 %v2219_v10, %v514_v54  ;;  %1540 = vmatprep.subr.bf16.mxu1 %v1582_v57 }
 0x172   :  { %v569_v26 = vpack.c.bf16 %v552_v55, %v551_v31  ;;  %v515_v53 = vmul.f32 %v2212_v19, %v476_v51  ;;  %1541 = vmatpush3.bf16.msra.mxu1 %v1582_v57  ;;  %v1584_v19 = vld [vmem:[%s2892_s5 + $0x8] sm:$0xff]  }
 0x173   :  { %1542 = vmatprep.subr.bf16.mxu1 %v1583_v58 }
 0x174   :  { %1536 = vmatprep.mubr.msk.bf16.mxu0 %vm59_vm0, %v569_v26  ;;  %v554_v43 = vadd.f32 %v2219_v10, %v515_v53  ;;  %v1585_v10 = vld [vmem:[%s2892_s5] sm:$0xff]  }
 0x176   :  { %v570_v52 = vpack.c.bf16 %v554_v43, %v553_v12  ;;  %1543 = vmatpush3.bf16.msra.mxu1 %v1583_v58 }
 0x177   :  { %1544 = vmatprep.subr.bf16.mxu1 %v1584_v19 }
 0x179   :  { %1537 = vmatmul.mubr.msk.bf16.gmra.mxu0 %vm59_vm0, %v570_v52 }
 0x17a   :  { %1545 = vmatpush3.bf16.msra.mxu1 %v1584_v19 }
 0x17b   :  { %1546 = vmatprep.subr.bf16.mxu1 %v1585_v10 }
 0x17e   :  { %1547 = vmatpush3.bf16.msra.mxu1 %v1585_v10 }
 0x201   :  { %v1510_v24 = vpop.f32.mrf.mxu0 }
 0x202   :  { %v685_v33 = vadd.f32 %v1510_v24, %v2345_v62 }
 0x203   :  { %v676_v40 = vpop.f32.mrf.mxu0 }
 0x204   :  { %v677_v9 = vadd.f32 %v2345_v62, %v676_v40  ;;  %v837_v47 = vmul.f32 %v685_v33, %v685_v33  ;;  %v2363_v35 = vmul.f32 0.5, %v685_v33 }
 0x205   :  { %v1511_v11 = vpop.f32.mrf.mxu0 }
 0x206   :  { %v835_v6 = vmul.f32 %v677_v9, %v677_v9  ;;  %v688_v56 = vadd.f32 %v1511_v11, %v2345_v62  ;;  %v869_v14 = vmul.f32 %v837_v47, %v685_v33  ;;  %v2368_v48 = vmul.f32 0.5, %v677_v9 }
 0x207   :  { %v679_v41 = vpop.f32.mrf.mxu0 }
 0x208   :  { %v867_v28 = vmul.f32 %v835_v6, %v677_v9  ;;  %v838_v18 = vmul.f32 %v688_v56, %v688_v56  ;;  %v901_v44 = vmul.f32 0.044715, %v869_v14  ;;  %v680_v60 = vadd.f32 %v2345_v62, %v679_v41 }
 0x209   :  { %v1514_v4 = vpop.f32.mrf.mxu0  ;;  %v2370_v42 = vmul.f32 0.5, %v688_v56 }
 0x20a   :  { %v701_v63 = vadd.f32 %v1514_v4, %v2345_v62  ;;  %v899_v25 = vmul.f32 0.044715, %v867_v28  ;;  %v870_v3 = vmul.f32 %v838_v18, %v688_v56  ;;  %v933_v13 = vadd.f32 %v901_v44, %v685_v33 }
 0x20b   :  { %v692_v21 = vpop.f32.mrf.mxu0  ;;  %v836_v16 = vmul.f32 %v680_v60, %v680_v60  ;;  %v2387_v12 = vmul.f32 0.5, %v680_v60 }
 0x20c   :  { %v693_v61 = vadd.f32 %v2345_v62, %v692_v21  ;;  %v841_v30 = vmul.f32 %v701_v63, %v701_v63  ;;  %v931_v49 = vadd.f32 %v899_v25, %v677_v9  ;;  %v902_v20 = vmul.f32 0.044715, %v870_v3 }
 0x20d   :  { %v1515_v59 = vpop.f32.mrf.mxu0  ;;  %v965_v46 = vmul.f32 0.7978846, %v933_v13  ;;  %v868_v29 = vmul.f32 %v836_v16, %v680_v60  ;;  %v2389_v57 = vmul.f32 0.5, %v701_v63 }
 0x20e   :  { %v704_v45 = vadd.f32 %v1515_v59, %v2345_v62  ;;  %v839_v22 = vmul.f32 %v693_v61, %v693_v61  ;;  %v873_v39 = vmul.f32 %v841_v30, %v701_v63  ;;  %v963_v43 = vmul.f32 0.7978846, %v931_v49 }
 0x20f   :  { %v695_v7 = vpop.f32.mrf.mxu0  ;;  %v934_v52 = vadd.f32 %v902_v20, %v688_v56  ;;  %1650 = vtanh.f32 %v965_v46  ;;  %v900_v19 = vmul.f32 0.044715, %v868_v29  ;;  %v2405_v59 = vmul.f32 0.5, %v693_v61 }
 0x210   :  { %v2351_v37 = vadd.f32 %v2345_v62, %v695_v7  ;;  %v842_v15 = vmul.f32 %v704_v45, %v704_v45  ;;  %v871_v36 = vmul.f32 %v839_v22, %v693_v61  ;;  %v905_v10 = vmul.f32 0.044715, %v873_v39 }
 0x211   :  { %v1518_v27 = vpop.f32.mrf.mxu0  ;;  %v966_v14 = vmul.f32 0.7978846, %v934_v52  ;;  %v932_v18 = vadd.f32 %v900_v19, %v680_v60  ;;  %1652 = vtanh.f32 %v963_v43 }
 0x212   :  { %v840_v0 = vmul.f32 %v2351_v37, %v2351_v37  ;;  %v2361_v34 = vadd.f32 %v1518_v27, %v2345_v62  ;;  %v874_v8 = vmul.f32 %v842_v15, %v704_v45  ;;  %v903_v24 = vmul.f32 0.044715, %v871_v36 }
 0x213   :  { %v708_v2 = vpop.f32.mrf.mxu0  ;;  %v937_v44 = vadd.f32 %v905_v10, %v701_v63  ;;  %1654 = vtanh.f32 %v966_v14  ;;  %v964_v52 = vmul.f32 0.7978846, %v932_v18 }
 0x214   :  { %v872_v1 = vmul.f32 %v840_v0, %v2351_v37  ;;  %v2366_v38 = vadd.f32 %v2345_v62, %v708_v2  ;;  %v845_v31 = vmul.f32 %v2361_v34, %v2361_v34  ;;  %v906_v33 = vmul.f32 0.044715, %v874_v8 }
 0x215   :  { %v1519_v32 = vpop.f32.mrf.mxu0  ;;  %v935_v27 = vadd.f32 %v903_v24, %v693_v61  ;;  %v2412_v0 = vmul.f32 0.5, %v704_v45 }
 0x216   :  { %v904_v17 = vmul.f32 0.044715, %v872_v1  ;;  %v2378_v55 = vadd.f32 %v1519_v32, %v2345_v62  ;;  %v843_v51 = vmul.f32 %v2366_v38, %v2366_v38  ;;  %v877_v41 = vmul.f32 %v845_v31, %v2361_v34 }
 0x217   :  { %v711_v23 = vpop.f32.mrf.mxu0  ;;  %v938_v25 = vadd.f32 %v906_v33, %v704_v45  ;;  %v969_v45 = vmul.f32 0.7978846, %v937_v44  ;;  %v2449_v44 = vmul.f32 0.5, %v2351_v37 }
 0x218   :  { %v2373_v5 = vadd.f32 %v2345_v62, %v711_v23  ;;  %v936_v11 = vadd.f32 %v904_v17, %v2351_v37  ;;  %v846_v9 = vmul.f32 %v2378_v55, %v2378_v55  ;;  %v875_v47 = vmul.f32 %v843_v51, %v2366_v38 }
 0x219   :  { %v1522_v50 = vpop.f32.mrf.mxu0  ;;  %v909_v3 = vmul.f32 0.044715, %v877_v41  ;;  %v967_v23 = vmul.f32 0.7978846, %v935_v27  ;;  %v970_v46 = vmul.f32 0.7978846, %v938_v25 }
 0x21a   :  { %v844_v54 = vmul.f32 %v2373_v5, %v2373_v5  ;;  %v2385_v26 = vadd.f32 %v1522_v50, %v2345_v62  ;;  %v878_v13 = vmul.f32 %v846_v9, %v2378_v55  ;;  %v968_v30 = vmul.f32 0.7978846, %v936_v11 }
 0x21b   :  { %v724_v53 = vpop.f32.mrf.mxu0  ;;  %v907_v22 = vmul.f32 0.044715, %v875_v47  ;;  %v941_v29 = vadd.f32 %v909_v3, %v2361_v34  ;;  %v2455_v3 = vmul.f32 0.5, %v2361_v34 }
 0x21c   :  { %v2392_v58 = vadd.f32 %v2345_v62, %v724_v53  ;;  %v876_v4 = vmul.f32 %v844_v54, %v2373_v5  ;;  %v849_v21 = vmul.f32 %v2385_v26, %v2385_v26  ;;  %v910_v39 = vmul.f32 0.044715, %v878_v13 }
 0x21d   :  { %v1523_v40 = vpop.f32.mrf.mxu0  ;;  %1656 = vtanh.f32 %v968_v30  ;;  %v939_v50 = vadd.f32 %v907_v22, %v2366_v38  ;;  %v973_v33 = vmul.f32 0.7978846, %v941_v29  ;;  %v2459_v30 = vmul.f32 0.5, %v2366_v38 }
 0x21e   :  { %v2403_v6 = vadd.f32 %v1523_v40, %v2345_v62  ;;  %v847_v7 = vmul.f32 %v2392_v58, %v2392_v58  ;;  %v908_v32 = vmul.f32 0.044715, %v876_v4  ;;  %v881_v15 = vmul.f32 %v849_v21, %v2385_v26  ;;  %v1651_v40 = vpop.eup %1650 }
 0x21f   :  { %v727_v56 = vpop.f32.mrf.mxu0  ;;  %1658 = vtanh.f32 %v967_v23  ;;  %v942_v11 = vadd.f32 %v910_v39, %v2378_v55  ;;  %v971_v9 = vmul.f32 0.7978846, %v939_v50  ;;  %v2473_v29 = vmul.f32 0.5, %v2378_v55 }
 0x220   :  { %v2410_v28 = vadd.f32 %v2345_v62, %v727_v56  ;;  %v850_v16 = vmul.f32 %v2403_v6, %v2403_v6  ;;  %v879_v60 = vmul.f32 %v847_v7, %v2392_v58  ;;  %v940_v8 = vadd.f32 %v908_v32, %v2373_v5 }
 0x221   :  { %v1526_v2 = vpop.f32.mrf.mxu0  ;;  %v913_v17 = vmul.f32 0.044715, %v881_v15  ;;  %1660 = vtanh.f32 %v969_v45  ;;  %v974_v13 = vmul.f32 0.7978846, %v942_v11  ;;  %v2479_v50 = vmul.f32 0.5, %v2373_v5 }
 0x222   :  { %v848_v63 = vmul.f32 %v2410_v28, %v2410_v28  ;;  %v2425_v49 = vadd.f32 %v1526_v2, %v2345_v62  ;;  %v882_v36 = vmul.f32 %v850_v16, %v2403_v6  ;;  %v911_v51 = vmul.f32 0.044715, %v879_v60 }
 0x223   :  { %v740_v1 = vpop.f32.mrf.mxu0  ;;  %1662 = vtanh.f32 %v970_v46  ;;  %v945_v47 = vadd.f32 %v913_v17, %v2385_v26  ;;  %v972_v56 = vmul.f32 0.7978846, %v940_v8  ;;  %v1029_v17 = vadd.f32 1.0, %v1651_v40 }
 0x224   :  { %v2422_v61 = vadd.f32 %v2345_v62, %v740_v1  ;;  %v880_v54 = vmul.f32 %v848_v63, %v2410_v28  ;;  %v853_v19 = vmul.f32 %v2425_v49, %v2425_v49  ;;  %v914_v41 = vmul.f32 0.044715, %v882_v36  ;;  %v1653_v63 = vpop.eup %1652 }
 0x225   :  { %v1527_v20 = vpop.f32.mrf.mxu0  ;;  %v943_v14 = vadd.f32 %v911_v51, %v2392_v58  ;;  %1664 = vtanh.f32 %v964_v52  ;;  %v977_v37 = vmul.f32 0.7978846, %v945_v47  ;;  %v1655_v46 = vpop.eup %1654  ;;  %v2491_v11 = vmul.f32 0.5, %v2392_v58 }
 0x226   :  { %v851_v53 = vmul.f32 %v2422_v61, %v2422_v61  ;;  %v2440_v10 = vadd.f32 %v1527_v20, %v2345_v62  ;;  %v912_v7 = vmul.f32 0.044715, %v880_v54  ;;  %v885_v27 = vmul.f32 %v853_v19, %v2425_v49 }
 0x227   :  { %v743_v31 = vpop.f32.mrf.mxu0  ;;  %1666 = vtanh.f32 %v973_v33  ;;  %v946_v16 = vadd.f32 %v914_v41, %v2403_v6  ;;  %v975_v15 = vmul.f32 0.7978846, %v943_v14  ;;  %v1027_v41 = vadd.f32 1.0, %v1653_v63 }
 0x228   :  { %v2435_v43 = vadd.f32 %v2345_v62, %v743_v31  ;;  %v883_v18 = vmul.f32 %v851_v53, %v2422_v61  ;;  %v854_v2 = vmul.f32 %v2440_v10, %v2440_v10  ;;  %1668 = vtanh.f32 %v971_v9 }
 0x229   :  { %v1530_v24 = vpop.f32.mrf.mxu0  ;;  %1670 = vtanh.f32 %v972_v56  ;;  %v944_v1 = vadd.f32 %v912_v7, %v2410_v28  ;;  %v917_v34 = vmul.f32 0.044715, %v885_v27  ;;  %v978_v39 = vmul.f32 0.7978846, %v946_v16 }
 0x22a   :  { %v852_v4 = vmul.f32 %v2435_v43, %v2435_v43  ;;  %v915_v60 = vmul.f32 0.044715, %v883_v18  ;;  %v886_v45 = vmul.f32 %v854_v2, %v2440_v10  ;;  %1672 = vtanh.f32 %v974_v13  ;;  %v1657_v51 = vpop.eup %1656 }
 0x22b   :  { %v756_v21 = vpop.f32.mrf.mxu0  ;;  %v2476_v36 = vadd.f32 %v1530_v24, %v2345_v62  ;;  %1674 = vtanh.f32 %v977_v37  ;;  %v976_v54 = vmul.f32 0.7978846, %v944_v1  ;;  %v949_v52 = vadd.f32 %v917_v34, %v2425_v49 }
 0x22c   :  { %v884_v22 = vmul.f32 %v852_v4, %v2435_v43  ;;  %v2465_v23 = vadd.f32 %v2345_v62, %v756_v21  ;;  %1676 = vtanh.f32 %v975_v15  ;;  %v947_v53 = vadd.f32 %v915_v60, %v2422_v61  ;;  %v1659_v40 = vpop.eup %1658 }
 0x22d   :  { %v1531_v25 = vpop.f32.mrf.mxu0  ;;  %v918_v19 = vmul.f32 0.044715, %v886_v45  ;;  %1678 = vtanh.f32 %v978_v39  ;;  %v857_v9 = vmul.f32 %v2476_v36, %v2476_v36  ;;  %v1030_v21 = vadd.f32 1.0, %v1655_v46 }
 0x22e   :  { %v916_v8 = vmul.f32 0.044715, %v884_v22  ;;  %v2483_v55 = vadd.f32 %v1531_v25, %v2345_v62  ;;  %v855_v24 = vmul.f32 %v2465_v23, %v2465_v23  ;;  %v1661_v47 = vpop.eup %1660  ;;  %v1032_v14 = vadd.f32 1.0, %v1657_v51 }
 0x22f   :  { %v759_v32 = vpop.f32.mrf.mxu0  ;;  %v2498_v27 = vmul.f32 0.5, %v2403_v6  ;;  %1680 = vtanh.f32 %v976_v54  ;;  %v979_v58 = vmul.f32 0.7978846, %v947_v53  ;;  %v981_v25 = vmul.f32 0.7978846, %v949_v52 }
 0x230   :  { %v2468_v38 = vadd.f32 %v2345_v62, %v759_v32  ;;  %v948_v4 = vadd.f32 %v916_v8, %v2435_v43  ;;  %v1663_v18 = vpop.eup %1662  ;;  %v858_v2 = vmul.f32 %v2483_v55, %v2483_v55  ;;  %v950_v13 = vadd.f32 %v918_v19, %v2440_v10 }
 0x231   :  { %v2470_v20 = vpop.f32.mrf.mxu0  ;;  %v887_v16 = vmul.f32 %v855_v24, %v2465_v23  ;;  %v1031_v37 = vadd.f32 1.0, %v1659_v40  ;;  %v1059_v15 = vmul.f32 %v1027_v41, %v2368_v48  ;;  %v889_v1 = vmul.f32 %v857_v9, %v2476_v36 }
 0x232   :  { %v856_v5 = vmul.f32 %v2468_v38, %v2468_v38  ;;  %v1665_v32 = vpop.eup %1664  ;;  %v980_v34 = vmul.f32 0.7978846, %v948_v4  ;;  %v1062_v46 = vmul.f32 %v1030_v21, %v2370_v42  ;;  %v1064_v39 = vmul.f32 %v1032_v14, %v2449_v44 }
 0x233   :  { %v772_v31 = vpop.f32.mrf.mxu0  ;;  %v1028_v45 = vadd.f32 1.0, %v1665_v32  ;;  %1682 = vtanh.f32 %v979_v58  ;;  %v1061_v51 = vmul.f32 %v1029_v17, %v2363_v35  ;;  %v890_v48 = vmul.f32 %v858_v2, %v2483_v55 }
 0x234   :  { %v888_v56 = vmul.f32 %v856_v5, %v2468_v38  ;;  %v2509_v60 = vadd.f32 %v2345_v62, %v772_v31  ;;  %v2511_v63 = vpop.eup %1666  ;;  %v982_v52 = vmul.f32 0.7978846, %v950_v13  ;;  %v919_v24 = vmul.f32 0.044715, %v887_v16 }
 0x235   :  { %v1535_v33 = vpop.f32.mrf.mxu0  ;;  %v1669_v8 = vpop.eup %1668  ;;  %v1060_v19 = vmul.f32 %v1028_v45, %v2387_v12  ;;  %v1063_v5 = vmul.f32 %v1031_v37, %v2405_v59  ;;  %v921_v42 = vmul.f32 0.044715, %v889_v1  ;;  %1684 = vtanh.f32 %v980_v34 }
 0x236   :  { %v920_v6 = vmul.f32 0.044715, %v888_v56  ;;  %v859_v54 = vmul.f32 %v2509_v60, %v2509_v60  ;;  %v1671_v31 = vpop.eup %1670  ;;  %v2523_v40 = vadd.f32 %v1535_v33, %v2345_v62  ;;  %v1092_v9 = vpack.c.bf16 %v1062_v46, %v1061_v51 }
 0x237   :  { %v775_v7 = vpop.f32.mrf.mxu0  ;;  %v1673_v17 = vpop.eup %1672  ;;  %v1091_v41 = vpack.c.bf16 %v1060_v19, %v1059_v15  ;;  %v1093_v4 = vpack.c.bf16 %v1064_v39, %v1063_v5  ;;  %v922_v12 = vmul.f32 0.044715, %v890_v48  ;;  %v2532_v59 = vadd.f32 %v2470_v20, %v2345_v62 }
 0x238   :  { %v952_v44 = vadd.f32 %v920_v6, %v2468_v38  ;;  %v2526_v35 = vadd.f32 %v2345_v62, %v775_v7  ;;  %v2528_v21 = vpop.eup %1674  ;;  %v1034_v56 = vadd.f32 1.0, %v1663_v18  ;;  %v891_v14 = vmul.f32 %v859_v54, %v2509_v60 }
 0x239   :  { %v2504_v22 = vpop.f32.mrf.mxu0  ;;  %v1677_v58 = vpop.eup %1676  ;;  %1548 = vmatprep.mubr.msk.bf16.mxu1 %vm1146_vm1, %v1091_v41  ;;  %v951_v7 = vadd.f32 %v919_v24, %v2465_v23  ;;  %v1035_v13 = vadd.f32 1.0, %v1669_v8  ;;  %v1036_v16 = vadd.f32 1.0, %v1671_v31  ;;  %1686 = vtanh.f32 %v981_v25 }
 0x23a   :  { %v860_v2 = vmul.f32 %v2526_v35, %v2526_v35  ;;  %1549 = vmatmul.mubr.msk.bf16.vlgmr.msra.gmra.mxu1 %vm1146_vm1, %v1092_v9  ;;  %v984_v37 = vmul.f32 0.7978846, %v952_v44  ;;  %v1033_v20 = vadd.f32 1.0, %v1661_v47  ;;  %v862_v18 = vmul.f32 %v2523_v40, %v2523_v40  ;;  %v2542_v32 = vpop.eup %1678 }
 0x23b   :  { %v788_v53 = vpop.f32.mrf.mxu0  ;;  %v816_v15 = vmul.f32 0.5, %v2410_v28  ;;  %1688 = vtanh.f32 %v982_v52  ;;  %1552 = vmatprep.mubr.msk.bf16.mxu1 %vm1146_vm1, %v1093_v4  ;;  %v1068_v6 = vmul.f32 %v1036_v16, %v2479_v50  ;;  %v953_v25 = vadd.f32 %v921_v42, %v2476_v36 }
 0x23c   :  { %v892_v1 = vmul.f32 %v860_v2, %v2526_v35  ;;  %v954_v34 = vadd.f32 %v922_v12, %v2483_v55  ;;  %v1066_v47 = vmul.f32 %v1034_v56, %v2412_v0  ;;  %v923_v45 = vmul.f32 0.044715, %v891_v14  ;;  %v1681_v39 = vpop.eup %1680 }
 0x23d   :  { %v1539_v33 = vpop.f32.mrf.mxu0  ;;  %v983_v8 = vmul.f32 0.7978846, %v951_v7  ;;  %v861_v28 = vmul.f32 %v2532_v59, %v2532_v59  ;;  %v1067_v48 = vmul.f32 %v1035_v13, %v2459_v30  ;;  %1690 = vtanh.f32 %v984_v37 }
 0x23e   :  { %v924_v51 = vmul.f32 0.044715, %v892_v1  ;;  %v1065_v54 = vmul.f32 %v1033_v20, %v2389_v57  ;;  %v894_v50 = vmul.f32 %v862_v18, %v2523_v40  ;;  %v2557_v31 = vadd.f32 %v2345_v62, %v788_v53 }
 0x23f   :  { %v791_v46 = vpop.f32.mrf.mxu0  ;;  %v1095_v52 = vpack.c.bf16 %v1068_v6, %v1067_v48  ;;  %v1038_v19 = vadd.f32 1.0, %v1673_v17  ;;  %v955_v42 = vadd.f32 %v923_v45, %v2509_v60  ;;  %v2567_v57 = vadd.f32 %v1539_v33, %v2345_v62 }
 0x240   :  { %v956_v0 = vadd.f32 %v924_v51, %v2526_v35  ;;  %v2561_v24 = vadd.f32 %v2345_v62, %v791_v46  ;;  %v1094_v5 = vpack.c.bf16 %v1066_v47, %v1065_v54  ;;  %v863_v30 = vmul.f32 %v2557_v31, %v2557_v31  ;;  %v1683_v44 = vpop.eup %1682 }
 0x241   :  { %1692 = vtanh.f32 %v983_v8  ;;  %v986_v53 = vmul.f32 0.7978846, %v954_v34  ;;  %v893_v41 = vmul.f32 %v861_v28, %v2532_v59  ;;  %v1037_v9 = vadd.f32 1.0, %v2511_v63 }
 0x242   :  { %1553 = vmatmul.mubr.msk.bf16.gmra.mxu1 %vm1146_vm1, %v1094_v5  ;;  %v926_v17 = vmul.f32 0.044715, %v894_v50  ;;  %v2574_v4 = vadd.f32 %v2504_v22, %v2345_v62  ;;  %v895_v12 = vmul.f32 %v863_v30, %v2557_v31  ;;  %v864_v56 = vmul.f32 %v2561_v24, %v2561_v24  ;;  %v1685_v63 = vpop.eup %1684 }
 0x243   :  { %v988_v14 = vmul.f32 0.7978846, %v956_v0  ;;  %1556 = vmatprep.mubr.msk.bf16.mxu1 %vm1146_vm1, %v1095_v52  ;;  %v1070_v33 = vmul.f32 %v1038_v19, %v2473_v29  ;;  %v1039_v7 = vadd.f32 1.0, %v1677_v58  ;;  %v1040_v2 = vadd.f32 1.0, %v1681_v39 }
 0x244   :  { %v985_v13 = vmul.f32 0.7978846, %v953_v25  ;;  %v987_v16 = vmul.f32 0.7978846, %v955_v42  ;;  %v866_v37 = vmul.f32 %v2567_v57, %v2567_v57  ;;  %v896_v62 = vmul.f32 %v864_v56, %v2561_v24 }
 0x245   :  { %v1069_v22 = vmul.f32 %v1037_v9, %v2455_v3  ;;  %v927_v20 = vmul.f32 0.044715, %v895_v12  ;;  %v1071_v18 = vmul.f32 %v1039_v7, %v2491_v11  ;;  %v1072_v1 = vmul.f32 %v1040_v2, %v816_v15 }
 0x246   :  { %1694 = vtanh.f32 %v986_v53  ;;  %v925_v6 = vmul.f32 0.044715, %v893_v41  ;;  %v865_v29 = vmul.f32 %v2574_v4, %v2574_v4  ;;  %v928_v58 = vmul.f32 0.044715, %v896_v62  ;;  %v1687_v34 = vpop.eup %1686 }
 0x247   :  { %v958_v25 = vadd.f32 %v926_v17, %v2523_v40  ;;  %1696 = vtanh.f32 %v988_v14  ;;  %v1096_v47 = vpack.c.bf16 %v1070_v33, %v1069_v22  ;;  %v1097_v45 = vpack.c.bf16 %v1072_v1, %v1071_v18 }
 0x248   :  { %v1689_v46 = vpop.eup %1688  ;;  %v898_v39 = vmul.f32 %v866_v37, %v2567_v57  ;;  %v960_v3 = vadd.f32 %v928_v58, %v2561_v24  ;;  %v1042_v11 = vadd.f32 1.0, %v2542_v32  ;;  %v1044_v15 = vadd.f32 1.0, %v1685_v63 }
 0x249   :  { %v820_v8 = vmul.f32 0.5, %v2435_v43  ;;  %1698 = vtanh.f32 %v987_v16  ;;  %v959_v28 = vadd.f32 %v927_v20, %v2557_v31  ;;  %v1043_v51 = vadd.f32 1.0, %v1683_v44 }
 0x24a   :  { %1700 = vtanh.f32 %v985_v13  ;;  %v957_v48 = vadd.f32 %v925_v6, %v2532_v59  ;;  %v897_v54 = vmul.f32 %v865_v29, %v2574_v4  ;;  %1557 = vmatmul.mubr.msk.bf16.gmra.mxu1 %vm1146_vm1, %v1096_v47  ;;  %v1041_v50 = vadd.f32 1.0, %v2528_v21  ;;  %v1691_v0 = vpop.eup %1690 }
 0x24b   :  { %v819_v52 = vmul.f32 0.5, %v2422_v61  ;;  %v992_v32 = vmul.f32 0.7978846, %v960_v3  ;;  %1560 = vmatprep.mubr.msk.bf16.mxu1 %vm1146_vm1, %v1097_v45  ;;  %v1076_v43 = vmul.f32 %v1044_v15, %v820_v8  ;;  %v817_v19 = vmul.f32 0.5, %v2385_v26 }
 0x24c   :  { %v990_v5 = vmul.f32 0.7978846, %v958_v25  ;;  %v930_v42 = vmul.f32 0.044715, %v898_v39  ;;  %v1074_v30 = vmul.f32 %v1042_v11, %v2498_v27  ;;  %v991_v44 = vmul.f32 0.7978846, %v959_v28 }
 0x24d   :  { %v1075_v53 = vmul.f32 %v1043_v51, %v819_v52  ;;  %v989_v9 = vmul.f32 0.7978846, %v957_v48  ;;  %v929_v17 = vmul.f32 0.044715, %v897_v54  ;;  %v1073_v12 = vmul.f32 %v1041_v50, %v817_v19 }
 0x24e   :  { %v1693_v41 = vpop.eup %1692  ;;  %1702 = vtanh.f32 %v992_v32  ;;  %v1048_v56 = vadd.f32 1.0, %v1691_v0  ;;  %v962_v61 = vadd.f32 %v930_v42, %v2567_v57  ;;  %v1046_v33 = vadd.f32 1.0, %v1689_v46 }
 0x24f   :  { %v1099_v21 = vpack.c.bf16 %v1076_v43, %v1075_v53  ;;  %1704 = vtanh.f32 %v990_v5  ;;  %v1098_v14 = vpack.c.bf16 %v1074_v30, %v1073_v12  ;;  %v824_v26 = vmul.f32 0.5, %v2468_v38 }
 0x250   :  { %1706 = vtanh.f32 %v991_v44  ;;  %v1047_v7 = vadd.f32 1.0, %v1693_v41  ;;  %v822_v27 = vmul.f32 0.5, %v2440_v10  ;;  %v961_v2 = vadd.f32 %v929_v17, %v2574_v4 }
 0x251   :  { %1708 = vtanh.f32 %v989_v9  ;;  %v1045_v63 = vadd.f32 1.0, %v1687_v34  ;;  %v823_v16 = vmul.f32 0.5, %v2465_v23  ;;  %v1080_v37 = vmul.f32 %v1048_v56, %v824_v26 }
 0x252   :  { %1561 = vmatmul.mubr.msk.bf16.gmra.mxu1 %vm1146_vm1, %v1098_v14  ;;  %v821_v22 = vmul.f32 0.5, %v2425_v49  ;;  %v994_v38 = vmul.f32 0.7978846, %v962_v61  ;;  %v1078_v20 = vmul.f32 %v1046_v33, %v822_v27  ;;  %v993_v10 = vmul.f32 0.7978846, %v961_v2 }
 0x253   :  { %v1695_v13 = vpop.eup %1694  ;;  %1564 = vmatprep.mubr.msk.bf16.mxu1 %vm1146_vm1, %v1099_v21  ;;  %v1079_v18 = vmul.f32 %v1047_v7, %v823_v16  ;;  %v828_v23 = vmul.f32 0.5, %v2526_v35  ;;  %v826_v46 = vmul.f32 0.5, %v2483_v55  ;;  %v827_v39 = vmul.f32 0.5, %v2509_v60  ;;  %v2630_v14 = vld [vmem:[%s2894_s6] ss:$0 sm:$0xff]  ;;  %v1714_v7 = vld [vmem:[%s2888_s0 + $0x10] sm:$0xff] }
 0x254   :  { %v1697_v62 = vpop.eup %1696  ;;  %v1077_v6 = vmul.f32 %v1045_v63, %v821_v22  ;;  %1710 = vtanh.f32 %v994_v38  ;;  %v1050_v47 = vadd.f32 1.0, %v1695_v13  ;;  %v825_v15 = vmul.f32 0.5, %v2476_v36  ;;  %v1715_v63 = vld [vmem:[%s2888_s0] sm:$0xff] }
 0x255   :  { %v1101_v58 = vpack.c.bf16 %v1080_v37, %v1079_v18  ;;  %v1052_v25 = vadd.f32 1.0, %v1697_v62  ;;  %1712 = vtanh.f32 %v993_v10  ;;  %v832_v32 = vmul.f32 0.5, %v2561_v24  ;;  %v1716_v62 = vld [vmem:[%s2888_s0 + $0x18] sm:$0xff]  ;;  %v1717_v18 = vld [vmem:[%s2888_s0 + $0x8] sm:$0xff] }
 0x256   :  { %v1699_v1 = vpop.eup %1698  ;;  %v1100_v34 = vpack.c.bf16 %v1078_v20, %v1077_v6  ;;  %v1082_v8 = vmul.f32 %v1050_v47, %v826_v46  ;;  %v830_v60 = vmul.f32 0.5, %v2523_v40  ;;  %v831_v36 = vmul.f32 0.5, %v2557_v31  ;;  %v1719_v47 = vld [vmem:[%s2888_s0 + $0x20] sm:$0xff] }
 0x257   :  { %v1701_v29 = vpop.eup %1700  ;;  %v1051_v45 = vadd.f32 1.0, %v1699_v1  ;;  %v1084_v3 = vmul.f32 %v1052_v25, %v828_v23  ;;  %v829_v42 = vmul.f32 0.5, %v2532_v59  ;;  %v834_v40 = vmul.f32 0.5, %v2567_v57 }
 0x258   :  { %v1049_v49 = vadd.f32 1.0, %v1701_v29  ;;  %v833_v31 = vmul.f32 0.5, %v2574_v4  ;;  %v1718_v29 = vld [vmem:[%s2888_s0 + $0x30] sm:$0xff] }
 0x259   :  { %v1083_v51 = vmul.f32 %v1051_v45, %v827_v39 }
 0x25a   :  { %1565 = vmatmul.mubr.msk.bf16.gmra.mxu1 %vm1146_vm1, %v1100_v34  ;;  %v1081_v35 = vmul.f32 %v1049_v49, %v825_v15  ;;  %v1720_v49 = vld [vmem:[%s2888_s0 + $0x38] sm:$0xff]  ;;  %v1721_v15 = vld [vmem:[%s2888_s0 + $0x28] sm:$0xff] }
 0x25b   :  { %1568 = vmatprep.mubr.msk.bf16.mxu1 %vm1146_vm1, %v1101_v58  ;;  %v1703_v11 = vpop.eup %1702  ;;  %v1103_v50 = vpack.c.bf16 %v1084_v3, %v1083_v51 }
 0x25c   :  { %v1705_v28 = vpop.eup %1704  ;;  %v1056_v55 = vadd.f32 1.0, %v1703_v11  ;;  %v1102_v0 = vpack.c.bf16 %v1082_v8, %v1081_v35 }
 0x25d   :  { %v1707_v48 = vpop.eup %1706  ;;  %v1054_v52 = vadd.f32 1.0, %v1705_v28 }
 0x25e   :  { %v1709_v54 = vpop.eup %1708  ;;  %v1055_v43 = vadd.f32 1.0, %v1707_v48  ;;  %v1088_v5 = vmul.f32 %v1056_v55, %v832_v32  ;;  %v1722_v48 = vld [vmem:[%s2888_s0 + $0x50] sm:$0xff]  ;;  %v1723_v55 = vld [vmem:[%s2888_s0 + $0x40] sm:$0xff] }
 0x25f   :  { %v1053_v19 = vadd.f32 1.0, %v1709_v54  ;;  %v1086_v30 = vmul.f32 %v1054_v52, %v830_v60 }
 0x260   :  { %v1087_v53 = vmul.f32 %v1055_v43, %v831_v36  ;;  %v1724_v43 = vld [vmem:[%s2888_s0 + $0x58] sm:$0xff] }
 0x261   :  { %v1711_v44 = vpop.eup %1710  ;;  %v1085_v41 = vmul.f32 %v1053_v19, %v829_v42 }
 0x262   :  { %1569 = vmatmul.mubr.msk.bf16.gmra.mxu1 %vm1146_vm1, %v1102_v0  ;;  %v1713_v9 = vpop.eup %1712  ;;  %v1105_v17 = vpack.c.bf16 %v1088_v5, %v1087_v53  ;;  %v1058_v12 = vadd.f32 1.0, %v1711_v44  ;;  %v1725_v5 = vld [vmem:[%s2888_s0 + $0x48] sm:$0xff]  ;;  %v1726_v53 = vld [vmem:[%s2888_s0 + $0x70] sm:$0xff] }
 0x263   :  { %1572 = vmatprep.mubr.msk.bf16.mxu1 %vm1146_vm1, %v1103_v50  ;;  %v1104_v24 = vpack.c.bf16 %v1086_v30, %v1085_v41  ;;  %v1057_v21 = vadd.f32 1.0, %v1713_v9 }
 0x264   :  { %v1090_v56 = vmul.f32 %v1058_v12, %v834_v40 }
 0x265   :  { %v1089_v61 = vmul.f32 %v1057_v21, %v833_v31  ;;  %v1728_v31 = vld [vmem:[%s2888_s0 + $0x78] sm:$0xff] }
 0x267   :  { %v1106_v59 = vpack.c.bf16 %v1090_v56, %v1089_v61 }
 0x26a   :  { %1573 = vmatmul.mubr.msk.bf16.gmra.mxu1 %vm1146_vm1, %v1104_v24  ;;  %v1727_v24 = vld [vmem:[%s2888_s0 + $0x60] sm:$0xff] }
 0x26b   :  { %1576 = vmatprep.mubr.msk.bf16.mxu1 %vm1146_vm1, %v1105_v17 }
 0x272   :  { %1577 = vmatmul.mubr.msk.bf16.gmra.mxu1 %vm1146_vm1, %v1106_v59 }
 0x2fa   :  { %v1550_v33 = vpop.f32.mrf.mxu1 }
 0x2fb   :  { %v1238_v57 = vadd.f32 %v1550_v33, %v2630_v14  ;;  %v1729_v33 = vld [vmem:[%s2888_s0 + $0x68] sm:$0xff] }
 0x2fc   :  { %v1229_v26 = vpop.f32.mrf.mxu1 }
 0x2fd   :  { %v1358_v27 = vadd.f32 %v1714_v7, %v1238_v57  ;;  %v1230_v4 = vadd.f32 %v2630_v14, %v1229_v26 }
 0x2fe   :  { %v1551_v2 = vpop.f32.mrf.mxu1 }
 0x2ff   :  { %1390 = vst.msk [vmem:[%s2895_s7 + $0x10] sm:$0xff] %vm59_vm0, %v1358_v27  ;;  %v1356_v13 = vadd.f32 %v1715_v63, %v1230_v4  ;;  %v1241_v16 = vadd.f32 %v1551_v2, %v2630_v14  ;;  %v1730_v27 = vld [vmem:[%s2888_s0 + $0x90] sm:$0xff] }
 0x300   :  { %v1232_v37 = vpop.f32.mrf.mxu1 }
 0x301   :  { %1388 = vst.msk [vmem:[%s2895_s7] sm:$0xff] %vm59_vm0, %v1356_v13  ;;  %v1359_v22 = vadd.f32 %v1716_v62, %v1241_v16  ;;  %v1233_v38 = vadd.f32 %v2630_v14, %v1232_v37  ;;  %v1731_v13 = vld [vmem:[%s2888_s0 + $0x80] sm:$0xff] }
 0x302   :  { %v1554_v20 = vpop.f32.mrf.mxu1 }
 0x303   :  { %1391 = vst.msk [vmem:[%s2895_s7 + $0x18] sm:$0xff] %vm59_vm0, %v1359_v22  ;;  %v1357_v1 = vadd.f32 %v1717_v18, %v1233_v38  ;;  %v1254_v10 = vadd.f32 %v1554_v20, %v2630_v14  ;;  %v1732_v22 = vld [vmem:[%s2888_s0 + $0x98] sm:$0xff] }
 0x304   :  { %v1245_v6 = vpop.f32.mrf.mxu1 }
 0x305   :  { %1389 = vst.msk [vmem:[%s2895_s7 + $0x8] sm:$0xff] %vm59_vm0, %v1357_v1  ;;  %v1362_v58 = vadd.f32 %v1718_v29, %v1254_v10  ;;  %v1246_v25 = vadd.f32 %v2630_v14, %v1245_v6  ;;  %v1733_v1 = vld [vmem:[%s2888_s0 + $0x88] sm:$0xff] }
 0x306   :  { %v1555_v34 = vpop.f32.mrf.mxu1 }
 0x307   :  { %1394 = vst.msk [vmem:[%s2895_s7 + $0x30] sm:$0xff] %vm59_vm0, %v1362_v58  ;;  %v1360_v23 = vadd.f32 %v1719_v47, %v1246_v25  ;;  %v1257_v45 = vadd.f32 %v1555_v34, %v2630_v14  ;;  %v1734_v58 = vld [vmem:[%s2888_s0 + $0xb0] sm:$0xff] }
 0x308   :  { %v1248_v46 = vpop.f32.mrf.mxu1 }
 0x309   :  { %1392 = vst.msk [vmem:[%s2895_s7 + $0x20] sm:$0xff] %vm59_vm0, %v1360_v23  ;;  %v1363_v39 = vadd.f32 %v1720_v49, %v1257_v45  ;;  %v1249_v3 = vadd.f32 %v2630_v14, %v1248_v46  ;;  %v1735_v23 = vld [vmem:[%s2888_s0 + $0xa0] sm:$0xff] }
 0x30a   :  { %v1558_v11 = vpop.f32.mrf.mxu1 }
 0x30b   :  { %1395 = vst.msk [vmem:[%s2895_s7 + $0x38] sm:$0xff] %vm59_vm0, %v1363_v39  ;;  %v1361_v8 = vadd.f32 %v1721_v15, %v1249_v3  ;;  %v1270_v28 = vadd.f32 %v1558_v11, %v2630_v14  ;;  %v1736_v39 = vld [vmem:[%s2888_s0 + $0xb8] sm:$0xff] }
 0x30c   :  { %v1261_v51 = vpop.f32.mrf.mxu1 }
 0x30d   :  { %1393 = vst.msk [vmem:[%s2895_s7 + $0x28] sm:$0xff] %vm59_vm0, %v1361_v8  ;;  %v1366_v35 = vadd.f32 %v1722_v48, %v1270_v28  ;;  %v1262_v54 = vadd.f32 %v2630_v14, %v1261_v51  ;;  %v1737_v8 = vld [vmem:[%s2888_s0 + $0xa8] sm:$0xff] }
 0x30e   :  { %v1559_v50 = vpop.f32.mrf.mxu1 }
 0x30f   :  { %1398 = vst.msk [vmem:[%s2895_s7 + $0x50] sm:$0xff] %vm59_vm0, %v1366_v35  ;;  %v1364_v0 = vadd.f32 %v1723_v55, %v1262_v54  ;;  %v1273_v52 = vadd.f32 %v1559_v50, %v2630_v14  ;;  %v1738_v35 = vld [vmem:[%s2888_s0 + $0xd0] sm:$0xff] }
 0x310   :  { %v1264_v32 = vpop.f32.mrf.mxu1 }
 0x311   :  { %1396 = vst.msk [vmem:[%s2895_s7 + $0x40] sm:$0xff] %vm59_vm0, %v1364_v0  ;;  %v1367_v60 = vadd.f32 %v1724_v43, %v1273_v52  ;;  %v1265_v19 = vadd.f32 %v2630_v14, %v1264_v32  ;;  %v1739_v0 = vld [vmem:[%s2888_s0 + $0xc0] sm:$0xff] }
 0x312   :  { %v1562_v36 = vpop.f32.mrf.mxu1 }
 0x313   :  { %1399 = vst.msk [vmem:[%s2895_s7 + $0x58] sm:$0xff] %vm59_vm0, %v1367_v60  ;;  %v1365_v42 = vadd.f32 %v1725_v5, %v1265_v19  ;;  %v1286_v30 = vadd.f32 %v1562_v36, %v2630_v14  ;;  %v1740_v60 = vld [vmem:[%s2888_s0 + $0xd8] sm:$0xff] }
 0x314   :  { %v1277_v44 = vpop.f32.mrf.mxu1 }
 0x315   :  { %1397 = vst.msk [vmem:[%s2895_s7 + $0x48] sm:$0xff] %vm59_vm0, %v1365_v42  ;;  %v1370_v41 = vadd.f32 %v1726_v53, %v1286_v30  ;;  %v1278_v9 = vadd.f32 %v2630_v14, %v1277_v44  ;;  %v1741_v42 = vld [vmem:[%s2888_s0 + $0xc8] sm:$0xff] }
 0x316   :  { %v1563_v17 = vpop.f32.mrf.mxu1 }
 0x317   :  { %1402 = vst.msk [vmem:[%s2895_s7 + $0x70] sm:$0xff] %vm59_vm0, %v1370_v41  ;;  %v1368_v12 = vadd.f32 %v1727_v24, %v1278_v9  ;;  %v1289_v40 = vadd.f32 %v1563_v17, %v2630_v14  ;;  %v1742_v41 = vld [vmem:[%s2888_s0 + $0xf0] sm:$0xff] }
 0x318   :  { %v1280_v21 = vpop.f32.mrf.mxu1 }
 0x319   :  { %1400 = vst.msk [vmem:[%s2895_s7 + $0x60] sm:$0xff] %vm59_vm0, %v1368_v12  ;;  %v1371_v56 = vadd.f32 %v1728_v31, %v1289_v40  ;;  %v1281_v61 = vadd.f32 %v2630_v14, %v1280_v21  ;;  %v1743_v12 = vld [vmem:[%s2888_s0 + $0xe0] sm:$0xff] }
 0x31a   :  { %v1566_v59 = vpop.f32.mrf.mxu1 }
 0x31b   :  { %1403 = vst.msk [vmem:[%s2895_s7 + $0x78] sm:$0xff] %vm59_vm0, %v1371_v56  ;;  %v1369_v57 = vadd.f32 %v1729_v33, %v1281_v61  ;;  %v1302_v26 = vadd.f32 %v1566_v59, %v2630_v14  ;;  %v1744_v56 = vld [vmem:[%s2888_s0 + $0xf8] sm:$0xff]  ;;  %v1745_v33 = vld [vmem:[%s2888_s0 + $0xe8] sm:$0xff] }
 0x31c   :  { %v1293_v7 = vpop.f32.mrf.mxu1 }
 0x31d   :  { %1401 = vst.msk [vmem:[%s2895_s7 + $0x68] sm:$0xff] %vm59_vm0, %v1369_v57  ;;  %v1374_v4 = vadd.f32 %v1730_v27, %v1302_v26  ;;  %v1294_v2 = vadd.f32 %v2630_v14, %v1293_v7 }
 0x31e   :  { %v1567_v63 = vpop.f32.mrf.mxu1 }
 0x31f   :  { %1406 = vst.msk [vmem:[%s2895_s7 + $0x90] sm:$0xff] %vm59_vm0, %v1374_v4  ;;  %v1372_v16 = vadd.f32 %v1731_v13, %v1294_v2  ;;  %v1305_v37 = vadd.f32 %v1567_v63, %v2630_v14 }
 0x320   :  { %v1296_v62 = vpop.f32.mrf.mxu1 }
 0x321   :  { %1404 = vst.msk [vmem:[%s2895_s7 + $0x80] sm:$0xff] %vm59_vm0, %v1372_v16  ;;  %v1375_v38 = vadd.f32 %v1732_v22, %v1305_v37  ;;  %v1297_v20 = vadd.f32 %v2630_v14, %v1296_v62 }
 0x322   :  { %v1570_v18 = vpop.f32.mrf.mxu1 }
 0x323   :  { %1407 = vst.msk [vmem:[%s2895_s7 + $0x98] sm:$0xff] %vm59_vm0, %v1375_v38  ;;  %v1373_v10 = vadd.f32 %v1733_v1, %v1297_v20  ;;  %v1318_v6 = vadd.f32 %v1570_v18, %v2630_v14 }
 0x324   :  { %v1309_v29 = vpop.f32.mrf.mxu1 }
 0x325   :  { %1405 = vst.msk [vmem:[%s2895_s7 + $0x88] sm:$0xff] %vm59_vm0, %v1373_v10  ;;  %v1378_v25 = vadd.f32 %v1734_v58, %v1318_v6  ;;  %v1310_v34 = vadd.f32 %v2630_v14, %v1309_v29 }
 0x326   :  { %v1571_v47 = vpop.f32.mrf.mxu1 }
 0x327   :  { %1410 = vst.msk [vmem:[%s2895_s7 + $0xb0] sm:$0xff] %vm59_vm0, %v1378_v25  ;;  %v1376_v45 = vadd.f32 %v1735_v23, %v1310_v34  ;;  %v1321_v46 = vadd.f32 %v1571_v47, %v2630_v14 }
 0x328   :  { %v1312_v49 = vpop.f32.mrf.mxu1 }
 0x329   :  { %1408 = vst.msk [vmem:[%s2895_s7 + $0xa0] sm:$0xff] %vm59_vm0, %v1376_v45  ;;  %v1379_v3 = vadd.f32 %v1736_v39, %v1321_v46  ;;  %v1313_v11 = vadd.f32 %v2630_v14, %v1312_v49 }
 0x32a   :  { %v1574_v15 = vpop.f32.mrf.mxu1 }
 0x32b   :  { %1411 = vst.msk [vmem:[%s2895_s7 + $0xb8] sm:$0xff] %vm59_vm0, %v1379_v3  ;;  %v1377_v28 = vadd.f32 %v1737_v8, %v1313_v11  ;;  %v1334_v51 = vadd.f32 %v1574_v15, %v2630_v14 }
 0x32c   :  { %v1325_v48 = vpop.f32.mrf.mxu1 }
 0x32d   :  { %1409 = vst.msk [vmem:[%s2895_s7 + $0xa8] sm:$0xff] %vm59_vm0, %v1377_v28  ;;  %v1382_v54 = vadd.f32 %v1738_v35, %v1334_v51  ;;  %v1326_v50 = vadd.f32 %v2630_v14, %v1325_v48 }
 0x32e   :  { %v1575_v55 = vpop.f32.mrf.mxu1 }
 0x32f   :  { %1414 = vst.msk [vmem:[%s2895_s7 + $0xd0] sm:$0xff] %vm59_vm0, %v1382_v54  ;;  %v1380_v52 = vadd.f32 %v1739_v0, %v1326_v50  ;;  %v1337_v32 = vadd.f32 %v1575_v55, %v2630_v14 }
 0x330   :  { %v1328_v43 = vpop.f32.mrf.mxu1 }
 0x331   :  { %1412 = vst.msk [vmem:[%s2895_s7 + $0xc0] sm:$0xff] %vm59_vm0, %v1380_v52  ;;  %v1383_v19 = vadd.f32 %v1740_v60, %v1337_v32  ;;  %v1329_v36 = vadd.f32 %v2630_v14, %v1328_v43 }
 0x332   :  { %v1578_v5 = vpop.f32.mrf.mxu1 }
 0x333   :  { %1415 = vst.msk [vmem:[%s2895_s7 + $0xd8] sm:$0xff] %vm59_vm0, %v1383_v19  ;;  %v1381_v30 = vadd.f32 %v1741_v42, %v1329_v36  ;;  %v1350_v44 = vadd.f32 %v1578_v5, %v2630_v14 }
 0x334   :  { %v1341_v53 = vpop.f32.mrf.mxu1 }
 0x335   :  { %1413 = vst.msk [vmem:[%s2895_s7 + $0xc8] sm:$0xff] %vm59_vm0, %v1381_v30  ;;  %v1386_v9 = vadd.f32 %v1742_v41, %v1350_v44  ;;  %v1342_v17 = vadd.f32 %v2630_v14, %v1341_v53 }
 0x336   :  { %v1579_v24 = vpop.f32.mrf.mxu1 }
 0x337   :  { %1418 = vst.msk [vmem:[%s2895_s7 + $0xf0] sm:$0xff] %vm59_vm0, %v1386_v9  ;;  %v1384_v40 = vadd.f32 %v1743_v12, %v1342_v17  ;;  %v1353_v21 = vadd.f32 %v1579_v24, %v2630_v14 }
 0x338   :  { %v1344_v31 = vpop.f32.mrf.mxu1 }
 0x339   :  { %1416 = vst.msk [vmem:[%s2895_s7 + $0xe0] sm:$0xff] %vm59_vm0, %v1384_v40  ;;  %v1387_v61 = vadd.f32 %v1744_v56, %v1353_v21  ;;  %v1345_v59 = vadd.f32 %v2630_v14, %v1344_v31 }
 0x33b   :  { %1419 = vst.msk [vmem:[%s2895_s7 + $0xf8] sm:$0xff] %vm59_vm0, %v1387_v61  ;;  %v1385_v57 = vadd.f32 %v1745_v33, %v1345_v59 }
 0x33d   :  { %1417 = vst.msk [vmem:[%s2895_s7 + $0xe8] sm:$0xff] %vm59_vm0, %v1385_v57 }

</bundles_post_ra>
